<compile_context>
chip_gen: v5e
topology: v5e:2x2
jax: 0.10.0
libtpu: 0.0.40
codegen_flags: <defaults>
</compile_context>

<pallas_src>
import math
import random
from functools import partial

import numpy as np
import jax
import jax.numpy as jnp
from jax.experimental import pallas as pl
from jax.experimental.pallas import tpu as pltpu


# ----------------------------------------------------------------------------
# Parameter-setup glue (numpy): sincos pos-embed + torch-style bicubic resize
# ----------------------------------------------------------------------------
def get_1d_sincos_pos_embed_from_grid(embed_dim, pos):
    assert embed_dim % 2 == 0
    omega = np.arange(embed_dim // 2, dtype=np.float32)
    omega /= embed_dim / 2.0
    omega = 1.0 / 10000 ** omega
    pos = pos.reshape(-1)
    out = np.einsum('m,d->md', pos, omega)
    return np.concatenate([np.sin(out), np.cos(out)], axis=1)


def get_2d_sincos_pos_embed_from_grid(embed_dim, grid):
    assert embed_dim % 2 == 0
    emb_h = get_1d_sincos_pos_embed_from_grid(embed_dim // 2, grid[0])
    emb_w = get_1d_sincos_pos_embed_from_grid(embed_dim // 2, grid[1])
    return np.concatenate([emb_h, emb_w], axis=1)


def get_2d_sincos_pos_embed(embed_dim, grid_size):
    grid_h = np.arange(grid_size, dtype=np.float32)
    grid_w = np.arange(grid_size, dtype=np.float32)
    grid = np.meshgrid(grid_w, grid_h)
    grid = np.stack(grid, axis=0).reshape([2, 1, grid_size, grid_size])
    return get_2d_sincos_pos_embed_from_grid(embed_dim, grid)


def get_matry_n(num_visual_tokens):
    # NOTE: 'second_stage' picks a random Mq per call, which would force a fresh Pallas
    # compile per distinct value.  Production callers should pad Mq to a fixed bucket.
    if num_visual_tokens == 'first_stage':
        return 256
    elif num_visual_tokens == 'second_stage':
        return random.choice(range(2, 258, 2))
    num_visual_tokens = int(num_visual_tokens)
    if 1 <= num_visual_tokens <= 256:
        return num_visual_tokens
    raise ValueError(f'Invalid input: {num_visual_tokens}')


def _cubic_weights(t, a=-0.75):
    # Cubic-convolution weights (PyTorch bicubic uses a = -0.75) for taps -1,0,1,2.
    t = np.asarray(t, dtype=np.float64)
    wm1 = a * (1 + t) ** 3 - 5 * a * (1 + t) ** 2 + 8 * a * (1 + t) - 4 * a
    w0 = (a + 2) * t ** 3 - (a + 3) * t ** 2 + 1
    w1 = (a + 2) * (1 - t) ** 3 - (a + 3) * (1 - t) ** 2 + 1
    w2 = a * (2 - t) ** 3 - 5 * a * (2 - t) ** 2 + 8 * a * (2 - t) - 4 * a
    return np.stack([wm1, w0, w1, w2], axis=-1)


def _resize_axis_bicubic(arr, out_size, axis):
    # align_corners=False half-pixel sampling with replicate border, as in torch.
    in_size = arr.shape[axis]
    scale = in_size / out_size
    coords = (np.arange(out_size) + 0.5) * scale - 0.5
    x0 = np.floor(coords).astype(np.int64)
    t = coords - x0
    w = _cubic_weights(t)                                            # (out, 4)
    idx = np.clip(x0[:, None] + np.arange(-1, 3)[None, :], 0, in_size - 1)
    gathered = np.take(arr, idx, axis=axis)                          # axis -> (out, 4)
    wshape = [1] * gathered.ndim
    wshape[axis] = out_size
    wshape[axis + 1] = 4
    return (gathered * w.reshape(wshape)).sum(axis=axis + 1)


def get_abs_pos_np(abs_pos, tgt_size):
    # abs_pos: (S*S, C) fp16-stored pos-embed; returns (tgt_h*tgt_w, C) float32
    src_size = int(math.sqrt(abs_pos.shape[0]))
    img = abs_pos.astype(np.float32).reshape(src_size, src_size, -1)   # H, W, C
    img = _resize_axis_bicubic(img, tgt_size[0], axis=0)
    img = _resize_axis_bicubic(img, tgt_size[1], axis=1)
    # mimic the .to(half) round-trip of the original code, compute continues in fp32
    return img.reshape(tgt_size[0] * tgt_size[1], -1).astype(np.float16).astype(np.float32)


# ----------------------------------------------------------------------------
# Fused Resampler kernel
#   prologue (batch-invariant): LN(q), LN(k) -> Q/K proj -> per-head softmax probs P_h
#   per grid step (batch block): LN_v(x) -> V proj -> P@V -> fused (out-proj @ proj)
# ----------------------------------------------------------------------------
def resampler_kernel(q_pre_ref, k_pre_ref, ln_w_ref, ln_b_ref,
                     w_qkv_ref, b_qkv_ref, wo_proj_ref, b_out_proj_ref,
                     x_ref, o_ref, *, num_heads, batch_block, seq_len):
    f32, bf16 = jnp.float32, jnp.bfloat16
    eps = 1e-6   # matches the module's norm_layer=partial(nn.LayerNorm, eps=1e-06)
    H, B, L = num_heads, batch_block, seq_len
    Mq = q_pre_ref.shape[0]
    E = x_ref.shape[-1]
    hd = E // H

    def layernorm(v, g, b):
        mu = jnp.mean(v, axis=-1, keepdims=True)
        d = v - mu
        var = jnp.mean(d * d, axis=-1, keepdims=True)
        return d * jax.lax.rsqrt(var + eps) * g + b

    # ---- Prologue: batch-invariant attention probabilities P_h = softmax(Qh Kh^T) ----
    # q_pre / k_pre (queries + pos-embed) do not depend on the batch, so P is shared by
    # every batch element.  It is recomputed per grid step (it is tiny relative to the
    # per-step V path) which keeps the batch axis safely "parallel" on v7x megacore.
    qn = layernorm(q_pre_ref[...], ln_w_ref[0:1, :], ln_b_ref[0:1, :]).astype(bf16)
    kn = layernorm(k_pre_ref[...], ln_w_ref[1:2, :], ln_b_ref[1:2, :]).astype(bf16)
    # Full-width (E,E) projections; the 1/sqrt(hd) scale is pre-folded into W_q / b_q.
    q = jnp.dot(qn, w_qkv_ref[0], preferred_element_type=f32) + b_qkv_ref[0:1, :]
    k = jnp.dot(kn, w_qkv_ref[1], preferred_element_type=f32) + b_qkv_ref[1:2, :]
    q_bf = q.astype(bf16)
    k_bf = k.astype(bf16)

    p_heads = []
    for h in range(H):                                    # H is small & static: unrolled
        qh = q_bf[:, h * hd:(h + 1) * hd]                 # (Mq, hd) static lane slice
        kh = k_bf[:, h * hd:(h + 1) * hd]                 # (L , hd)
        s = jax.lax.dot_general(qh, kh, (((1,), (1,)), ((), ())),
                                preferred_element_type=f32)          # (Mq, L) scores
        s = s - jnp.max(s, axis=-1, keepdims=True)
        e = jnp.exp(s)
        p = e * pl.reciprocal(jnp.sum(e, axis=-1, keepdims=True), approx=True)
        p_heads.append(p.astype(bf16))

    # ---- Per-step body: LN_v -> full-width V projection -> P@V -> fused out-proj ----
    x = x_ref[...]                                        # (B*L, E) f32, batch flattened
    vn = layernorm(x, ln_w_ref[2:3, :], ln_b_ref[2:3, :])
    v = jnp.dot(vn.astype(bf16), w_qkv_ref[2],
                preferred_element_type=f32) + b_qkv_ref[2:3, :]      # (B*L, E)
    v_bf = v.astype(bf16)

    b_out_proj = b_out_proj_ref[...]                      # (1, D) f32
    for b in range(B):                                    # static unroll over batch block
        acc = None
        for h in range(H):
            vbh = v_bf[b * L:(b + 1) * L, h * hd:(h + 1) * hd]         # (L, hd)
            oh = jnp.dot(p_heads[h], vbh, preferred_element_type=f32)  # (Mq, hd)
            # out-proj and final `proj` fused per head (done once in the wrapper):
            #   concat_h(oh_h) @ W_out @ proj == sum_h oh_h @ (W_out_h @ proj)
            ohd = jnp.dot(oh.astype(bf16), wo_proj_ref[h],
                          preferred_element_type=f32)                  # (Mq, D)
            acc = ohd if acc is None else acc + ohd
        o_ref[b] = (acc + b_out_proj).astype(o_ref.dtype)


# ----------------------------------------------------------------------------
# Wrapper
# ----------------------------------------------------------------------------
def resampler_forward(x, q_pre, k_pre, ln_w, ln_b, w_qkv_t, b_qkv,
                      w_out_t, b_out, proj, num_heads, batch_block=None):
    # TODO(synk): attn_mask path not implemented (forward is exercised with attn_mask=None).
    N, L, E = x.shape
    Mq = q_pre.shape[0]
    D = proj.shape[1]
    H = num_heads
    hd = E // H
    scale = 1.0 / math.sqrt(hd)
    bf16 = jnp.bfloat16

    # Batch block: largest divisor of N that is <= 8 (keeps >= 2 grid steps for v7x
    # megacore sharding when N is large; demo N=2 -> B=2, grid=(1,)).
    if batch_block is None:
        batch_block = 1
        for cand in range(min(N, 8), 0, -1):
            if N % cand == 0:
                batch_block = cand
                break
    B = batch_block
    assert N % B == 0
    assert (B * L) % 8 == 0 or B == N, "x block rows must be sublane-aligned"

    # --- trace-time weight re-layouts (all free at runtime) ---
    # 1/sqrt(hd) folded into the Q weights/bias; MXU weights pre-cast to bf16.
    w_qkv_s = jnp.stack([w_qkv_t[0] * scale, w_qkv_t[1], w_qkv_t[2]], axis=0).astype(bf16)
    b_qkv_s = jnp.stack([b_qkv[0] * scale, b_qkv[1], b_qkv[2]], axis=0)          # (3, E) f32
    # Fuse out-proj with the final `proj`:  (H, hd, E) @ (E, D) -> (H, hd, D)
    wo_proj = jnp.einsum('hce,ed->hcd', w_out_t.reshape(H, hd, E), proj).astype(bf16)
    b_out_proj = (b_out @ proj).reshape(1, D)                                    # (1, D) f32

    # Flatten batch into rows so the V projection runs on B*L rows per grid step.
    x_flat = x.reshape(N * L, E)

    kern = partial(resampler_kernel, num_heads=H, batch_block=B, seq_len=L)

    # VMEM budget from actual block bytes (x2 double-buffering) + headroom for
    # intermediates; fits comfortably inside v7x's 64 MiB as well as v5e/v6e.
    def nbytes(shape, dtype):
        return int(np.prod(shape)) * jnp.dtype(dtype).itemsize
    block_bytes = (nbytes((Mq, E), jnp.float32) + nbytes((L, E), jnp.float32)
                   + 2 * nbytes((3, E), jnp.float32)
                   + nbytes((3, E, E), bf16) + nbytes((3, E), jnp.float32)
                   + nbytes((H, hd, D), bf16) + nbytes((1, D), jnp.float32)
                   + nbytes((B * L, E), jnp.float32) + nbytes((B, Mq, D), jnp.float32))
    vmem_limit = int(min(64 * 1024 * 1024,
                         max(16 * 1024 * 1024, 2 * block_bytes + 4 * 1024 * 1024)))
    # TODO(synk): at production L/E, single-buffer the grid-invariant inputs
    # (pipeline_mode=pl.Buffered(1)) to halve the resident weight footprint on v7x.

    return pl.pallas_call(
        kern,
        out_shape=jax.ShapeDtypeStruct((N, Mq, D), jnp.float32),
        grid=(N // B,),
        in_specs=[
            pl.BlockSpec((Mq, E), lambda i: (0, 0)),            # q_pre (batch-invariant)
            pl.BlockSpec((L, E), lambda i: (0, 0)),             # k_pre (batch-invariant)
            pl.BlockSpec((3, E), lambda i: (0, 0)),             # LN gammas (q, k, v)
            pl.BlockSpec((3, E), lambda i: (0, 0)),             # LN betas  (q, k, v)
            pl.BlockSpec((3, E, E), lambda i: (0, 0, 0)),       # W_q/W_k/W_v (bf16, Q scaled)
            pl.BlockSpec((3, E), lambda i: (0, 0)),             # b_q/b_k/b_v (Q scaled)
            pl.BlockSpec((H, hd, D), lambda i: (0, 0, 0)),      # W_out @ proj, per head (bf16)
            pl.BlockSpec((1, D), lambda i: (0, 0)),             # b_out @ proj
            pl.BlockSpec((B * L, E), lambda i: (i, 0)),         # x rows for this batch block
        ],
        out_specs=pl.BlockSpec((B, Mq, D), lambda i: (i, 0, 0)),
        compiler_params=pltpu.CompilerParams(
            dimension_semantics=("parallel",),
            vmem_limit_bytes=vmem_limit),
    )(q_pre, k_pre, ln_w, ln_b, w_qkv_s, b_qkv_s, wo_proj, b_out_proj, x_flat)


# ----------------------------------------------------------------------------
# Pure-JAX reference of the same math (same bf16 cast points), for a sanity check
# ----------------------------------------------------------------------------
def reference_forward(x, q_pre, k_pre, ln_w, ln_b, w_qkv_t, b_qkv,
                      w_out_t, b_out, proj, num_heads):
    bf16, f32 = jnp.bfloat16, jnp.float32

    def ln(v, g, b):
        mu = v.mean(-1, keepdims=True)
        var = ((v - mu) ** 2).mean(-1, keepdims=True)
        return (v - mu) / jnp.sqrt(var + 1e-6) * g + b

    N, L, E = x.shape
    H = num_heads
    hd = E // H
    Mq = q_pre.shape[0]

    qn = ln(q_pre, ln_w[0], ln_b[0]).astype(bf16)
    kn = ln(k_pre, ln_w[1], ln_b[1]).astype(bf16)
    vn = ln(x, ln_w[2], ln_b[2]).astype(bf16)
    Q = jnp.dot(qn, w_qkv_t[0].astype(bf16), preferred_element_type=f32) + b_qkv[0]
    K = jnp.dot(kn, w_qkv_t[1].astype(bf16), preferred_element_type=f32) + b_qkv[1]
    V = jnp.einsum('nle,ed->nld', vn, w_qkv_t[2].astype(bf16),
                   preferred_element_type=f32) + b_qkv[2]

    Qh = (Q / math.sqrt(hd)).astype(bf16).reshape(Mq, H, hd)
    Kh = K.astype(bf16).reshape(L, H, hd)
    s = jnp.einsum('qhd,khd->hqk', Qh, Kh, preferred_element_type=f32)
    p = jax.nn.softmax(s, axis=-1).astype(bf16)
    Vh = V.reshape(N, L, H, hd).astype(bf16)
    o = jnp.einsum('hqk,nkhd->nqhd', p, Vh, preferred_element_type=f32).reshape(N, Mq, E)
    o = jnp.einsum('nqe,ef->nqf', o.astype(bf16), w_out_t.astype(bf16),
                   preferred_element_type=f32) + b_out[0]
    return jnp.einsum('nqe,ed->nqd', o.astype(bf16), proj.astype(bf16),
                      preferred_element_type=f32)


# ----------------------------------------------------------------------------
if __name__ == "__main__":
    # Small but lane/sublane-friendly configuration (E and D multiples of 128, L of 8)
    grid_size = 4            # -> num_queries = 16
    kv_dim = 128             # attention embed dim E
    embed_dim = 128          # output projection dim D
    num_heads = 4            # -> head dim 32
    N = 2                    # batch
    tgt_size = (8, 8)        # -> L = 64 image tokens
    num_visual_tokens = 16   # matry_n

    num_queries = grid_size ** 2
    L = tgt_size[0] * tgt_size[1]

    key = jax.random.PRNGKey(0)
    (k_query, k_inproj, k_outproj, k_proj, k_x,
     k_lnw, k_lnb, k_bin, k_bout) = jax.random.split(key, 9)

    pos_embed_np = get_2d_sincos_pos_embed(kv_dim, grid_size).astype(np.float16).astype(np.float32)
    pos_embed = jnp.asarray(pos_embed_np)                                   # (num_queries, kv_dim)

    query = 0.02 * jax.random.truncated_normal(k_query, -2.0, 2.0,
                                               (num_queries, kv_dim), jnp.float32)
    in_proj_w = jax.random.normal(k_inproj, (3 * kv_dim, kv_dim), jnp.float32) / math.sqrt(kv_dim)
    out_proj_w = 0.02 * jax.random.truncated_normal(k_outproj, -2.0, 2.0,
                                                    (kv_dim, kv_dim), jnp.float32)
    proj = embed_dim ** (-0.5) * jax.random.normal(k_proj, (kv_dim, embed_dim), jnp.float32)

    # PyTorch init uses zero biases / unit LN weights; randomized slightly here purely so
    # the self-check exercises the bias / LN-affine code paths of the kernel.
    ln_w = 1.0 + 0.1 * jax.random.normal(k_lnw, (3, kv_dim), jnp.float32)
    ln_b = 0.05 * jax.random.normal(k_lnb, (3, kv_dim), jnp.float32)
    in_proj_b = 0.02 * jax.random.normal(k_bin, (3 * kv_dim,), jnp.float32)
    out_proj_b = 0.02 * jax.random.normal(k_bout, (kv_dim,), jnp.float32)

    # Pack weights for right-multiplication (torch does x @ W^T + b)
    w_qkv_t = jnp.stack([in_proj_w[i * kv_dim:(i + 1) * kv_dim].T for i in range(3)], axis=0)
    b_qkv = in_proj_b.reshape(3, kv_dim)
    w_out_t = out_proj_w.T
    b_out = out_proj_b.reshape(1, kv_dim)

    # Input: (batch, seq=L, kv_dim); PyTorch forward receives (N, L, E) and permutes internally
    x = jax.random.normal(k_x, (N, L, kv_dim), jnp.float32)

    # Forward-pass glue (matches Resampler.forward)
    matry_n = get_matry_n(num_visual_tokens)
    k_pre = jnp.asarray(get_abs_pos_np(pos_embed_np, tgt_size))             # (L, kv_dim)
    q_pre = query[:matry_n] + pos_embed[:matry_n]                           # (matry_n, kv_dim)

    out = resampler_forward(x, q_pre, k_pre, ln_w, ln_b, w_qkv_t, b_qkv,
                            w_out_t, b_out, proj, num_heads)
    out = jax.block_until_ready(out)

    ref = reference_forward(x, q_pre, k_pre, ln_w, ln_b, w_qkv_t, b_qkv,
                            w_out_t, b_out, proj, num_heads)
    np.testing.assert_allclose(np.asarray(out), np.asarray(ref), atol=2e-2, rtol=2e-2)

    assert out.shape == (N, matry_n, embed_dim)
    print("KERNEL_OK")
</pallas_src>

<mosaic_0001>
module attributes {stable_mosaic.version = 11 : i64} {
  func.func @resampler_kernel(%arg0: i32, %arg1: memref<16x128xf32, #tpu.memory_space<vmem>>, %arg2: memref<64x128xf32, #tpu.memory_space<vmem>>, %arg3: memref<3x128xf32, #tpu.memory_space<vmem>>, %arg4: memref<3x128xf32, #tpu.memory_space<vmem>>, %arg5: memref<3x128x128xbf16, #tpu.memory_space<vmem>>, %arg6: memref<3x128xf32, #tpu.memory_space<vmem>>, %arg7: memref<4x32x128xbf16, #tpu.memory_space<vmem>>, %arg8: memref<1x128xf32, #tpu.memory_space<vmem>>, %arg9: memref<128x128xf32, #tpu.memory_space<vmem>>, %arg10: memref<2x16x128xf32, #tpu.memory_space<vmem>>) attributes {dimension_semantics = [#tpu.dimension_semantics<parallel>], iteration_bounds = array<i64: 1>, scalar_prefetch = 0 : i64, scratch_operands = 0 : i64, tpu.core_type = #tpu.core_type<tc>, window_params = [{pipeline_mode = #tpu.pipeline_mode<synchronous>, transform_indices = @transform_0, window_bounds = array<i64: 16, 128>}, {pipeline_mode = #tpu.pipeline_mode<synchronous>, transform_indices = @transform_1, window_bounds = array<i64: 64, 128>}, {pipeline_mode = #tpu.pipeline_mode<synchronous>, transform_indices = @transform_2, window_bounds = array<i64: 3, 128>}, {pipeline_mode = #tpu.pipeline_mode<synchronous>, transform_indices = @transform_3, window_bounds = array<i64: 3, 128>}, {pipeline_mode = #tpu.pipeline_mode<synchronous>, transform_indices = @transform_4, window_bounds = array<i64: 3, 128, 128>}, {pipeline_mode = #tpu.pipeline_mode<synchronous>, transform_indices = @transform_5, window_bounds = array<i64: 3, 128>}, {pipeline_mode = #tpu.pipeline_mode<synchronous>, transform_indices = @transform_6, window_bounds = array<i64: 4, 32, 128>}, {pipeline_mode = #tpu.pipeline_mode<synchronous>, transform_indices = @transform_7, window_bounds = array<i64: 1, 128>}, {transform_indices = @transform_8, window_bounds = array<i64: 128, 128>}, {transform_indices = @transform_9, window_bounds = array<i64: 2, 16, 128>}]} {
    %c0 = arith.constant 0 : index
    %c0_0 = arith.constant 0 : index
    %0 = vector.load %arg1[%c0, %c0_0] : memref<16x128xf32, #tpu.memory_space<vmem>>, vector<16x128xf32>
    %c0_1 = arith.constant 0 : index
    %c0_2 = arith.constant 0 : index
    %1 = vector.load %arg3[%c0_1, %c0_2] : memref<3x128xf32, #tpu.memory_space<vmem>>, vector<1x128xf32>
    %c0_3 = arith.constant 0 : index
    %c0_4 = arith.constant 0 : index
    %2 = vector.load %arg4[%c0_3, %c0_4] : memref<3x128xf32, #tpu.memory_space<vmem>>, vector<1x128xf32>
    %cst = arith.constant dense<0.000000e+00> : vector<16xf32>
    %3 = vector.multi_reduction <add>, %0, %cst [1] : vector<16x128xf32> to vector<16xf32>
    %4 = vector.shape_cast %3 : vector<16xf32> to vector<16x1xf32>
    %cst_5 = arith.constant 1.280000e+02 : f32
    %5 = vector.broadcast %cst_5 : f32 to vector<16x1xf32>
    %6 = arith.divf %4, %5 : vector<16x1xf32>
    %7 = vector.broadcast %6 : vector<16x1xf32> to vector<16x128xf32>
    %8 = arith.subf %0, %7 : vector<16x128xf32>
    %9 = arith.mulf %8, %8 : vector<16x128xf32>
    %cst_6 = arith.constant dense<0.000000e+00> : vector<16xf32>
    %10 = vector.multi_reduction <add>, %9, %cst_6 [1] : vector<16x128xf32> to vector<16xf32>
    %11 = vector.shape_cast %10 : vector<16xf32> to vector<16x1xf32>
    %cst_7 = arith.constant 1.280000e+02 : f32
    %12 = vector.broadcast %cst_7 : f32 to vector<16x1xf32>
    %13 = arith.divf %11, %12 : vector<16x1xf32>
    %cst_8 = arith.constant 9.99999997E-7 : f32
    %14 = vector.broadcast %cst_8 : f32 to vector<16x1xf32>
    %15 = arith.addf %13, %14 : vector<16x1xf32>
    %16 = math.rsqrt %15 : vector<16x1xf32>
    %17 = vector.broadcast %16 : vector<16x1xf32> to vector<16x128xf32>
    %18 = arith.mulf %8, %17 : vector<16x128xf32>
    %19 = vector.broadcast %1 : vector<1x128xf32> to vector<16x128xf32>
    %20 = arith.mulf %18, %19 : vector<16x128xf32>
    %21 = vector.broadcast %2 : vector<1x128xf32> to vector<16x128xf32>
    %22 = arith.addf %20, %21 : vector<16x128xf32>
    %23 = arith.truncf %22 : vector<16x128xf32> to vector<16x128xbf16>
    %c0_9 = arith.constant 0 : index
    %c0_10 = arith.constant 0 : index
    %24 = vector.load %arg2[%c0_9, %c0_10] : memref<64x128xf32, #tpu.memory_space<vmem>>, vector<64x128xf32>
    %c1 = arith.constant 1 : index
    %c0_11 = arith.constant 0 : index
    %25 = vector.load %arg3[%c1, %c0_11] : memref<3x128xf32, #tpu.memory_space<vmem>>, vector<1x128xf32>
    %c1_12 = arith.constant 1 : index
    %c0_13 = arith.constant 0 : index
    %26 = vector.load %arg4[%c1_12, %c0_13] : memref<3x128xf32, #tpu.memory_space<vmem>>, vector<1x128xf32>
    %cst_14 = arith.constant dense<0.000000e+00> : vector<64xf32>
    %27 = vector.multi_reduction <add>, %24, %cst_14 [1] : vector<64x128xf32> to vector<64xf32>
    %28 = vector.shape_cast %27 : vector<64xf32> to vector<64x1xf32>
    %cst_15 = arith.constant 1.280000e+02 : f32
    %29 = vector.broadcast %cst_15 : f32 to vector<64x1xf32>
    %30 = arith.divf %28, %29 : vector<64x1xf32>
    %31 = vector.broadcast %30 : vector<64x1xf32> to vector<64x128xf32>
    %32 = arith.subf %24, %31 : vector<64x128xf32>
    %33 = arith.mulf %32, %32 : vector<64x128xf32>
    %cst_16 = arith.constant dense<0.000000e+00> : vector<64xf32>
    %34 = vector.multi_reduction <add>, %33, %cst_16 [1] : vector<64x128xf32> to vector<64xf32>
    %35 = vector.shape_cast %34 : vector<64xf32> to vector<64x1xf32>
    %cst_17 = arith.constant 1.280000e+02 : f32
    %36 = vector.broadcast %cst_17 : f32 to vector<64x1xf32>
    %37 = arith.divf %35, %36 : vector<64x1xf32>
    %cst_18 = arith.constant 9.99999997E-7 : f32
    %38 = vector.broadcast %cst_18 : f32 to vector<64x1xf32>
    %39 = arith.addf %37, %38 : vector<64x1xf32>
    %40 = math.rsqrt %39 : vector<64x1xf32>
    %41 = vector.broadcast %40 : vector<64x1xf32> to vector<64x128xf32>
    %42 = arith.mulf %32, %41 : vector<64x128xf32>
    %43 = vector.broadcast %25 : vector<1x128xf32> to vector<64x128xf32>
    %44 = arith.mulf %42, %43 : vector<64x128xf32>
    %45 = vector.broadcast %26 : vector<1x128xf32> to vector<64x128xf32>
    %46 = arith.addf %44, %45 : vector<64x128xf32>
    %47 = arith.truncf %46 : vector<64x128xf32> to vector<64x128xbf16>
    %c0_19 = arith.constant 0 : index
    %c0_20 = arith.constant 0 : index
    %c0_21 = arith.constant 0 : index
    %48 = vector.load %arg5[%c0_19, %c0_20, %c0_21] : memref<3x128x128xbf16, #tpu.memory_space<vmem>>, vector<1x128x128xbf16>
    %49 = vector.shape_cast %48 : vector<1x128x128xbf16> to vector<128x128xbf16>
    %cst_22 = arith.constant dense<0.000000e+00> : vector<16x128xf32>
    %50 = tpu.matmul %23, %49, %cst_22 {dimension_numbers = #tpu.dot_dimension_numbers<[1], [0], [0], [1], [0, 0, 1, 1], [], []>} : vector<16x128xbf16>, vector<128x128xbf16>, vector<16x128xf32> -> vector<16x128xf32>
    %c0_23 = arith.constant 0 : index
    %c0_24 = arith.constant 0 : index
    %51 = vector.load %arg6[%c0_23, %c0_24] : memref<3x128xf32, #tpu.memory_space<vmem>>, vector<1x128xf32>
    %52 = vector.broadcast %51 : vector<1x128xf32> to vector<16x128xf32>
    %53 = arith.addf %50, %52 : vector<16x128xf32>
    %c1_25 = arith.constant 1 : index
    %c0_26 = arith.constant 0 : index
    %c0_27 = arith.constant 0 : index
    %54 = vector.load %arg5[%c1_25, %c0_26, %c0_27] : memref<3x128x128xbf16, #tpu.memory_space<vmem>>, vector<1x128x128xbf16>
    %55 = vector.shape_cast %54 : vector<1x128x128xbf16> to vector<128x128xbf16>
    %cst_28 = arith.constant dense<0.000000e+00> : vector<64x128xf32>
    %56 = tpu.matmul %47, %55, %cst_28 {dimension_numbers = #tpu.dot_dimension_numbers<[1], [0], [0], [1], [0, 0, 1, 1], [], []>} : vector<64x128xbf16>, vector<128x128xbf16>, vector<64x128xf32> -> vector<64x128xf32>
    %c1_29 = arith.constant 1 : index
    %c0_30 = arith.constant 0 : index
    %57 = vector.load %arg6[%c1_29, %c0_30] : memref<3x128xf32, #tpu.memory_space<vmem>>, vector<1x128xf32>
    %58 = vector.broadcast %57 : vector<1x128xf32> to vector<64x128xf32>
    %59 = arith.addf %56, %58 : vector<64x128xf32>
    %60 = arith.truncf %53 : vector<16x128xf32> to vector<16x128xbf16>
    %61 = arith.truncf %59 : vector<64x128xf32> to vector<64x128xbf16>
    %62 = vector.extract_strided_slice %60 {offsets = [0, 0], sizes = [16, 32], strides = [1, 1]} : vector<16x128xbf16> to vector<16x32xbf16>
    %63 = vector.extract_strided_slice %61 {offsets = [0, 0], sizes = [64, 32], strides = [1, 1]} : vector<64x128xbf16> to vector<64x32xbf16>
    %cst_31 = arith.constant dense<0.000000e+00> : vector<16x64xf32>
    %64 = tpu.matmul %62, %63, %cst_31 {dimension_numbers = #tpu.dot_dimension_numbers<[1], [1], [0], [0], [0, 0, 1, 0], [], []>} : vector<16x32xbf16>, vector<64x32xbf16>, vector<16x64xf32> -> vector<16x64xf32>
    %cst_32 = arith.constant dense<0xFF800000> : vector<16xf32>
    %65 = vector.multi_reduction <maximumf>, %64, %cst_32 [1] : vector<16x64xf32> to vector<16xf32>
    %66 = vector.shape_cast %65 : vector<16xf32> to vector<16x1xf32>
    %67 = vector.broadcast %66 : vector<16x1xf32> to vector<16x64xf32>
    %68 = arith.subf %64, %67 : vector<16x64xf32>
    %69 = math.exp %68 : vector<16x64xf32>
    %cst_33 = arith.constant dense<0.000000e+00> : vector<16xf32>
    %70 = vector.multi_reduction <add>, %69, %cst_33 [1] : vector<16x64xf32> to vector<16xf32>
    %71 = vector.shape_cast %70 : vector<16xf32> to vector<16x1xf32>
    %72 = tpu.reciprocal %71 {approx = true} : vector<16x1xf32> -> vector<16x1xf32>
    %73 = vector.broadcast %72 : vector<16x1xf32> to vector<16x64xf32>
    %74 = arith.mulf %69, %73 : vector<16x64xf32>
    %75 = arith.truncf %74 : vector<16x64xf32> to vector<16x64xbf16>
    %76 = vector.extract_strided_slice %60 {offsets = [0, 32], sizes = [16, 32], strides = [1, 1]} : vector<16x128xbf16> to vector<16x32xbf16>
    %77 = vector.extract_strided_slice %61 {offsets = [0, 32], sizes = [64, 32], strides = [1, 1]} : vector<64x128xbf16> to vector<64x32xbf16>
    %cst_34 = arith.constant dense<0.000000e+00> : vector<16x64xf32>
    %78 = tpu.matmul %76, %77, %cst_34 {dimension_numbers = #tpu.dot_dimension_numbers<[1], [1], [0], [0], [0, 0, 1, 0], [], []>} : vector<16x32xbf16>, vector<64x32xbf16>, vector<16x64xf32> -> vector<16x64xf32>
    %cst_35 = arith.constant dense<0xFF800000> : vector<16xf32>
    %79 = vector.multi_reduction <maximumf>, %78, %cst_35 [1] : vector<16x64xf32> to vector<16xf32>
    %80 = vector.shape_cast %79 : vector<16xf32> to vector<16x1xf32>
    %81 = vector.broadcast %80 : vector<16x1xf32> to vector<16x64xf32>
    %82 = arith.subf %78, %81 : vector<16x64xf32>
    %83 = math.exp %82 : vector<16x64xf32>
    %cst_36 = arith.constant dense<0.000000e+00> : vector<16xf32>
    %84 = vector.multi_reduction <add>, %83, %cst_36 [1] : vector<16x64xf32> to vector<16xf32>
    %85 = vector.shape_cast %84 : vector<16xf32> to vector<16x1xf32>
    %86 = tpu.reciprocal %85 {approx = true} : vector<16x1xf32> -> vector<16x1xf32>
    %87 = vector.broadcast %86 : vector<16x1xf32> to vector<16x64xf32>
    %88 = arith.mulf %83, %87 : vector<16x64xf32>
    %89 = arith.truncf %88 : vector<16x64xf32> to vector<16x64xbf16>
    %90 = vector.extract_strided_slice %60 {offsets = [0, 64], sizes = [16, 32], strides = [1, 1]} : vector<16x128xbf16> to vector<16x32xbf16>
    %91 = vector.extract_strided_slice %61 {offsets = [0, 64], sizes = [64, 32], strides = [1, 1]} : vector<64x128xbf16> to vector<64x32xbf16>
    %cst_37 = arith.constant dense<0.000000e+00> : vector<16x64xf32>
    %92 = tpu.matmul %90, %91, %cst_37 {dimension_numbers = #tpu.dot_dimension_numbers<[1], [1], [0], [0], [0, 0, 1, 0], [], []>} : vector<16x32xbf16>, vector<64x32xbf16>, vector<16x64xf32> -> vector<16x64xf32>
    %cst_38 = arith.constant dense<0xFF800000> : vector<16xf32>
    %93 = vector.multi_reduction <maximumf>, %92, %cst_38 [1] : vector<16x64xf32> to vector<16xf32>
    %94 = vector.shape_cast %93 : vector<16xf32> to vector<16x1xf32>
    %95 = vector.broadcast %94 : vector<16x1xf32> to vector<16x64xf32>
    %96 = arith.subf %92, %95 : vector<16x64xf32>
    %97 = math.exp %96 : vector<16x64xf32>
    %cst_39 = arith.constant dense<0.000000e+00> : vector<16xf32>
    %98 = vector.multi_reduction <add>, %97, %cst_39 [1] : vector<16x64xf32> to vector<16xf32>
    %99 = vector.shape_cast %98 : vector<16xf32> to vector<16x1xf32>
    %100 = tpu.reciprocal %99 {approx = true} : vector<16x1xf32> -> vector<16x1xf32>
    %101 = vector.broadcast %100 : vector<16x1xf32> to vector<16x64xf32>
    %102 = arith.mulf %97, %101 : vector<16x64xf32>
    %103 = arith.truncf %102 : vector<16x64xf32> to vector<16x64xbf16>
    %104 = vector.extract_strided_slice %60 {offsets = [0, 96], sizes = [16, 32], strides = [1, 1]} : vector<16x128xbf16> to vector<16x32xbf16>
    %105 = vector.extract_strided_slice %61 {offsets = [0, 96], sizes = [64, 32], strides = [1, 1]} : vector<64x128xbf16> to vector<64x32xbf16>
    %cst_40 = arith.constant dense<0.000000e+00> : vector<16x64xf32>
    %106 = tpu.matmul %104, %105, %cst_40 {dimension_numbers = #tpu.dot_dimension_numbers<[1], [1], [0], [0], [0, 0, 1, 0], [], []>} : vector<16x32xbf16>, vector<64x32xbf16>, vector<16x64xf32> -> vector<16x64xf32>
    %cst_41 = arith.constant dense<0xFF800000> : vector<16xf32>
    %107 = vector.multi_reduction <maximumf>, %106, %cst_41 [1] : vector<16x64xf32> to vector<16xf32>
    %108 = vector.shape_cast %107 : vector<16xf32> to vector<16x1xf32>
    %109 = vector.broadcast %108 : vector<16x1xf32> to vector<16x64xf32>
    %110 = arith.subf %106, %109 : vector<16x64xf32>
    %111 = math.exp %110 : vector<16x64xf32>
    %cst_42 = arith.constant dense<0.000000e+00> : vector<16xf32>
    %112 = vector.multi_reduction <add>, %111, %cst_42 [1] : vector<16x64xf32> to vector<16xf32>
    %113 = vector.shape_cast %112 : vector<16xf32> to vector<16x1xf32>
    %114 = tpu.reciprocal %113 {approx = true} : vector<16x1xf32> -> vector<16x1xf32>
    %115 = vector.broadcast %114 : vector<16x1xf32> to vector<16x64xf32>
    %116 = arith.mulf %111, %115 : vector<16x64xf32>
    %117 = arith.truncf %116 : vector<16x64xf32> to vector<16x64xbf16>
    %c0_43 = arith.constant 0 : index
    %c0_44 = arith.constant 0 : index
    %118 = vector.load %arg9[%c0_43, %c0_44] : memref<128x128xf32, #tpu.memory_space<vmem>>, vector<128x128xf32>
    %c2 = arith.constant 2 : index
    %c0_45 = arith.constant 0 : index
    %119 = vector.load %arg3[%c2, %c0_45] : memref<3x128xf32, #tpu.memory_space<vmem>>, vector<1x128xf32>
    %c2_46 = arith.constant 2 : index
    %c0_47 = arith.constant 0 : index
    %120 = vector.load %arg4[%c2_46, %c0_47] : memref<3x128xf32, #tpu.memory_space<vmem>>, vector<1x128xf32>
    %cst_48 = arith.constant dense<0.000000e+00> : vector<128xf32>
    %121 = vector.multi_reduction <add>, %118, %cst_48 [1] : vector<128x128xf32> to vector<128xf32>
    %122 = vector.shape_cast %121 : vector<128xf32> to vector<128x1xf32>
    %cst_49 = arith.constant 1.280000e+02 : f32
    %123 = vector.broadcast %cst_49 : f32 to vector<128x1xf32>
    %124 = arith.divf %122, %123 : vector<128x1xf32>
    %125 = vector.broadcast %124 : vector<128x1xf32> to vector<128x128xf32>
    %126 = arith.subf %118, %125 : vector<128x128xf32>
    %127 = arith.mulf %126, %126 : vector<128x128xf32>
    %cst_50 = arith.constant dense<0.000000e+00> : vector<128xf32>
    %128 = vector.multi_reduction <add>, %127, %cst_50 [1] : vector<128x128xf32> to vector<128xf32>
    %129 = vector.shape_cast %128 : vector<128xf32> to vector<128x1xf32>
    %cst_51 = arith.constant 1.280000e+02 : f32
    %130 = vector.broadcast %cst_51 : f32 to vector<128x1xf32>
    %131 = arith.divf %129, %130 : vector<128x1xf32>
    %cst_52 = arith.constant 9.99999997E-7 : f32
    %132 = vector.broadcast %cst_52 : f32 to vector<128x1xf32>
    %133 = arith.addf %131, %132 : vector<128x1xf32>
    %134 = math.rsqrt %133 : vector<128x1xf32>
    %135 = vector.broadcast %134 : vector<128x1xf32> to vector<128x128xf32>
    %136 = arith.mulf %126, %135 : vector<128x128xf32>
    %137 = vector.broadcast %119 : vector<1x128xf32> to vector<128x128xf32>
    %138 = arith.mulf %136, %137 : vector<128x128xf32>
    %139 = vector.broadcast %120 : vector<1x128xf32> to vector<128x128xf32>
    %140 = arith.addf %138, %139 : vector<128x128xf32>
    %141 = arith.truncf %140 : vector<128x128xf32> to vector<128x128xbf16>
    %c2_53 = arith.constant 2 : index
    %c0_54 = arith.constant 0 : index
    %c0_55 = arith.constant 0 : index
    %142 = vector.load %arg5[%c2_53, %c0_54, %c0_55] : memref<3x128x128xbf16, #tpu.memory_space<vmem>>, vector<1x128x128xbf16>
    %143 = vector.shape_cast %142 : vector<1x128x128xbf16> to vector<128x128xbf16>
    %cst_56 = arith.constant dense<0.000000e+00> : vector<128x128xf32>
    %144 = tpu.matmul %141, %143, %cst_56 {dimension_numbers = #tpu.dot_dimension_numbers<[1], [0], [0], [1], [0, 0, 1, 1], [], []>} : vector<128x128xbf16>, vector<128x128xbf16>, vector<128x128xf32> -> vector<128x128xf32>
    %c2_57 = arith.constant 2 : index
    %c0_58 = arith.constant 0 : index
    %145 = vector.load %arg6[%c2_57, %c0_58] : memref<3x128xf32, #tpu.memory_space<vmem>>, vector<1x128xf32>
    %146 = vector.broadcast %145 : vector<1x128xf32> to vector<128x128xf32>
    %147 = arith.addf %144, %146 : vector<128x128xf32>
    %148 = arith.truncf %147 : vector<128x128xf32> to vector<128x128xbf16>
    %c0_59 = arith.constant 0 : index
    %c0_60 = arith.constant 0 : index
    %149 = vector.load %arg8[%c0_59, %c0_60] : memref<1x128xf32, #tpu.memory_space<vmem>>, vector<1x128xf32>
    %150 = vector.extract_strided_slice %148 {offsets = [0, 0], sizes = [64, 32], strides = [1, 1]} : vector<128x128xbf16> to vector<64x32xbf16>
    %cst_61 = arith.constant dense<0.000000e+00> : vector<16x32xf32>
    %151 = tpu.matmul %75, %150, %cst_61 {dimension_numbers = #tpu.dot_dimension_numbers<[1], [0], [0], [1], [0, 0, 1, 1], [], []>} : vector<16x64xbf16>, vector<64x32xbf16>, vector<16x32xf32> -> vector<16x32xf32>
    %152 = arith.truncf %151 : vector<16x32xf32> to vector<16x32xbf16>
    %c0_62 = arith.constant 0 : index
    %c0_63 = arith.constant 0 : index
    %c0_64 = arith.constant 0 : index
    %153 = vector.load %arg7[%c0_62, %c0_63, %c0_64] : memref<4x32x128xbf16, #tpu.memory_space<vmem>>, vector<1x32x128xbf16>
    %154 = vector.shape_cast %153 : vector<1x32x128xbf16> to vector<32x128xbf16>
    %cst_65 = arith.constant dense<0.000000e+00> : vector<16x128xf32>
    %155 = tpu.matmul %152, %154, %cst_65 {dimension_numbers = #tpu.dot_dimension_numbers<[1], [0], [0], [1], [0, 0, 1, 1], [], []>} : vector<16x32xbf16>, vector<32x128xbf16>, vector<16x128xf32> -> vector<16x128xf32>
    %156 = vector.extract_strided_slice %148 {offsets = [0, 32], sizes = [64, 32], strides = [1, 1]} : vector<128x128xbf16> to vector<64x32xbf16>
    %cst_66 = arith.constant dense<0.000000e+00> : vector<16x32xf32>
    %157 = tpu.matmul %89, %156, %cst_66 {dimension_numbers = #tpu.dot_dimension_numbers<[1], [0], [0], [1], [0, 0, 1, 1], [], []>} : vector<16x64xbf16>, vector<64x32xbf16>, vector<16x32xf32> -> vector<16x32xf32>
    %158 = arith.truncf %157 : vector<16x32xf32> to vector<16x32xbf16>
    %c1_67 = arith.constant 1 : index
    %c0_68 = arith.constant 0 : index
    %c0_69 = arith.constant 0 : index
    %159 = vector.load %arg7[%c1_67, %c0_68, %c0_69] : memref<4x32x128xbf16, #tpu.memory_space<vmem>>, vector<1x32x128xbf16>
    %160 = vector.shape_cast %159 : vector<1x32x128xbf16> to vector<32x128xbf16>
    %cst_70 = arith.constant dense<0.000000e+00> : vector<16x128xf32>
    %161 = tpu.matmul %158, %160, %cst_70 {dimension_numbers = #tpu.dot_dimension_numbers<[1], [0], [0], [1], [0, 0, 1, 1], [], []>} : vector<16x32xbf16>, vector<32x128xbf16>, vector<16x128xf32> -> vector<16x128xf32>
    %162 = arith.addf %155, %161 : vector<16x128xf32>
    %163 = vector.extract_strided_slice %148 {offsets = [0, 64], sizes = [64, 32], strides = [1, 1]} : vector<128x128xbf16> to vector<64x32xbf16>
    %cst_71 = arith.constant dense<0.000000e+00> : vector<16x32xf32>
    %164 = tpu.matmul %103, %163, %cst_71 {dimension_numbers = #tpu.dot_dimension_numbers<[1], [0], [0], [1], [0, 0, 1, 1], [], []>} : vector<16x64xbf16>, vector<64x32xbf16>, vector<16x32xf32> -> vector<16x32xf32>
    %165 = arith.truncf %164 : vector<16x32xf32> to vector<16x32xbf16>
    %c2_72 = arith.constant 2 : index
    %c0_73 = arith.constant 0 : index
    %c0_74 = arith.constant 0 : index
    %166 = vector.load %arg7[%c2_72, %c0_73, %c0_74] : memref<4x32x128xbf16, #tpu.memory_space<vmem>>, vector<1x32x128xbf16>
    %167 = vector.shape_cast %166 : vector<1x32x128xbf16> to vector<32x128xbf16>
    %cst_75 = arith.constant dense<0.000000e+00> : vector<16x128xf32>
    %168 = tpu.matmul %165, %167, %cst_75 {dimension_numbers = #tpu.dot_dimension_numbers<[1], [0], [0], [1], [0, 0, 1, 1], [], []>} : vector<16x32xbf16>, vector<32x128xbf16>, vector<16x128xf32> -> vector<16x128xf32>
    %169 = arith.addf %162, %168 : vector<16x128xf32>
    %170 = vector.extract_strided_slice %148 {offsets = [0, 96], sizes = [64, 32], strides = [1, 1]} : vector<128x128xbf16> to vector<64x32xbf16>
    %cst_76 = arith.constant dense<0.000000e+00> : vector<16x32xf32>
    %171 = tpu.matmul %117, %170, %cst_76 {dimension_numbers = #tpu.dot_dimension_numbers<[1], [0], [0], [1], [0, 0, 1, 1], [], []>} : vector<16x64xbf16>, vector<64x32xbf16>, vector<16x32xf32> -> vector<16x32xf32>
    %172 = arith.truncf %171 : vector<16x32xf32> to vector<16x32xbf16>
    %c3 = arith.constant 3 : index
    %c0_77 = arith.constant 0 : index
    %c0_78 = arith.constant 0 : index
    %173 = vector.load %arg7[%c3, %c0_77, %c0_78] : memref<4x32x128xbf16, #tpu.memory_space<vmem>>, vector<1x32x128xbf16>
    %174 = vector.shape_cast %173 : vector<1x32x128xbf16> to vector<32x128xbf16>
    %cst_79 = arith.constant dense<0.000000e+00> : vector<16x128xf32>
    %175 = tpu.matmul %172, %174, %cst_79 {dimension_numbers = #tpu.dot_dimension_numbers<[1], [0], [0], [1], [0, 0, 1, 1], [], []>} : vector<16x32xbf16>, vector<32x128xbf16>, vector<16x128xf32> -> vector<16x128xf32>
    %176 = arith.addf %169, %175 : vector<16x128xf32>
    %177 = vector.broadcast %149 : vector<1x128xf32> to vector<16x128xf32>
    %178 = arith.addf %176, %177 : vector<16x128xf32>
    %c0_80 = arith.constant 0 : index
    %c0_81 = arith.constant 0 : index
    %c0_82 = arith.constant 0 : index
    %179 = vector.load %arg10[%c0_80, %c0_81, %c0_82] : memref<2x16x128xf32, #tpu.memory_space<vmem>>, vector<1x16x128xf32>
    %180 = vector.shape_cast %179 : vector<1x16x128xf32> to vector<16x128xf32>
    %181 = vector.shape_cast %178 : vector<16x128xf32> to vector<1x16x128xf32>
    tpu.vector_store %arg10[%c0_80, %c0_81, %c0_82], %181 {strides = array<i32>} : memref<2x16x128xf32, #tpu.memory_space<vmem>>, vector<1x16x128xf32>,
    %182 = vector.extract_strided_slice %148 {offsets = [64, 0], sizes = [64, 32], strides = [1, 1]} : vector<128x128xbf16> to vector<64x32xbf16>
    %cst_83 = arith.constant dense<0.000000e+00> : vector<16x32xf32>
    %183 = tpu.matmul %75, %182, %cst_83 {dimension_numbers = #tpu.dot_dimension_numbers<[1], [0], [0], [1], [0, 0, 1, 1], [], []>} : vector<16x64xbf16>, vector<64x32xbf16>, vector<16x32xf32> -> vector<16x32xf32>
    %184 = arith.truncf %183 : vector<16x32xf32> to vector<16x32xbf16>
    %c0_84 = arith.constant 0 : index
    %c0_85 = arith.constant 0 : index
    %c0_86 = arith.constant 0 : index
    %185 = vector.load %arg7[%c0_84, %c0_85, %c0_86] : memref<4x32x128xbf16, #tpu.memory_space<vmem>>, vector<1x32x128xbf16>
    %186 = vector.shape_cast %185 : vector<1x32x128xbf16> to vector<32x128xbf16>
    %cst_87 = arith.constant dense<0.000000e+00> : vector<16x128xf32>
    %187 = tpu.matmul %184, %186, %cst_87 {dimension_numbers = #tpu.dot_dimension_numbers<[1], [0], [0], [1], [0, 0, 1, 1], [], []>} : vector<16x32xbf16>, vector<32x128xbf16>, vector<16x128xf32> -> vector<16x128xf32>
    %188 = vector.extract_strided_slice %148 {offsets = [64, 32], sizes = [64, 32], strides = [1, 1]} : vector<128x128xbf16> to vector<64x32xbf16>
    %cst_88 = arith.constant dense<0.000000e+00> : vector<16x32xf32>
    %189 = tpu.matmul %89, %188, %cst_88 {dimension_numbers = #tpu.dot_dimension_numbers<[1], [0], [0], [1], [0, 0, 1, 1], [], []>} : vector<16x64xbf16>, vector<64x32xbf16>, vector<16x32xf32> -> vector<16x32xf32>
    %190 = arith.truncf %189 : vector<16x32xf32> to vector<16x32xbf16>
    %c1_89 = arith.constant 1 : index
    %c0_90 = arith.constant 0 : index
    %c0_91 = arith.constant 0 : index
    %191 = vector.load %arg7[%c1_89, %c0_90, %c0_91] : memref<4x32x128xbf16, #tpu.memory_space<vmem>>, vector<1x32x128xbf16>
    %192 = vector.shape_cast %191 : vector<1x32x128xbf16> to vector<32x128xbf16>
    %cst_92 = arith.constant dense<0.000000e+00> : vector<16x128xf32>
    %193 = tpu.matmul %190, %192, %cst_92 {dimension_numbers = #tpu.dot_dimension_numbers<[1], [0], [0], [1], [0, 0, 1, 1], [], []>} : vector<16x32xbf16>, vector<32x128xbf16>, vector<16x128xf32> -> vector<16x128xf32>
    %194 = arith.addf %187, %193 : vector<16x128xf32>
    %195 = vector.extract_strided_slice %148 {offsets = [64, 64], sizes = [64, 32], strides = [1, 1]} : vector<128x128xbf16> to vector<64x32xbf16>
    %cst_93 = arith.constant dense<0.000000e+00> : vector<16x32xf32>
    %196 = tpu.matmul %103, %195, %cst_93 {dimension_numbers = #tpu.dot_dimension_numbers<[1], [0], [0], [1], [0, 0, 1, 1], [], []>} : vector<16x64xbf16>, vector<64x32xbf16>, vector<16x32xf32> -> vector<16x32xf32>
    %197 = arith.truncf %196 : vector<16x32xf32> to vector<16x32xbf16>
    %c2_94 = arith.constant 2 : index
    %c0_95 = arith.constant 0 : index
    %c0_96 = arith.constant 0 : index
    %198 = vector.load %arg7[%c2_94, %c0_95, %c0_96] : memref<4x32x128xbf16, #tpu.memory_space<vmem>>, vector<1x32x128xbf16>
    %199 = vector.shape_cast %198 : vector<1x32x128xbf16> to vector<32x128xbf16>
    %cst_97 = arith.constant dense<0.000000e+00> : vector<16x128xf32>
    %200 = tpu.matmul %197, %199, %cst_97 {dimension_numbers = #tpu.dot_dimension_numbers<[1], [0], [0], [1], [0, 0, 1, 1], [], []>} : vector<16x32xbf16>, vector<32x128xbf16>, vector<16x128xf32> -> vector<16x128xf32>
    %201 = arith.addf %194, %200 : vector<16x128xf32>
    %202 = vector.extract_strided_slice %148 {offsets = [64, 96], sizes = [64, 32], strides = [1, 1]} : vector<128x128xbf16> to vector<64x32xbf16>
    %cst_98 = arith.constant dense<0.000000e+00> : vector<16x32xf32>
    %203 = tpu.matmul %117, %202, %cst_98 {dimension_numbers = #tpu.dot_dimension_numbers<[1], [0], [0], [1], [0, 0, 1, 1], [], []>} : vector<16x64xbf16>, vector<64x32xbf16>, vector<16x32xf32> -> vector<16x32xf32>
    %204 = arith.truncf %203 : vector<16x32xf32> to vector<16x32xbf16>
    %c3_99 = arith.constant 3 : index
    %c0_100 = arith.constant 0 : index
    %c0_101 = arith.constant 0 : index
    %205 = vector.load %arg7[%c3_99, %c0_100, %c0_101] : memref<4x32x128xbf16, #tpu.memory_space<vmem>>, vector<1x32x128xbf16>
    %206 = vector.shape_cast %205 : vector<1x32x128xbf16> to vector<32x128xbf16>
    %cst_102 = arith.constant dense<0.000000e+00> : vector<16x128xf32>
    %207 = tpu.matmul %204, %206, %cst_102 {dimension_numbers = #tpu.dot_dimension_numbers<[1], [0], [0], [1], [0, 0, 1, 1], [], []>} : vector<16x32xbf16>, vector<32x128xbf16>, vector<16x128xf32> -> vector<16x128xf32>
    %208 = arith.addf %201, %207 : vector<16x128xf32>
    %209 = vector.broadcast %149 : vector<1x128xf32> to vector<16x128xf32>
    %210 = arith.addf %208, %209 : vector<16x128xf32>
    %c1_103 = arith.constant 1 : index
    %c0_104 = arith.constant 0 : index
    %c0_105 = arith.constant 0 : index
    %211 = vector.load %arg10[%c1_103, %c0_104, %c0_105] : memref<2x16x128xf32, #tpu.memory_space<vmem>>, vector<1x16x128xf32>
    %212 = vector.shape_cast %211 : vector<1x16x128xf32> to vector<16x128xf32>
    %213 = vector.shape_cast %210 : vector<16x128xf32> to vector<1x16x128xf32>
    tpu.vector_store %arg10[%c1_103, %c0_104, %c0_105], %213 {strides = array<i32>} : memref<2x16x128xf32, #tpu.memory_space<vmem>>, vector<1x16x128xf32>,
    return
  }
  func.func @transform_0(%arg0: i32) -> (i32, i32) {
    %c0_i32 = arith.constant 0 : i32
    %c0_i32_0 = arith.constant 0 : i32
    %c0_i32_1 = arith.constant 0 : i32
    return %c0_i32, %c0_i32_0 : i32, i32
  }
  func.func @transform_1(%arg0: i32) -> (i32, i32) {
    %c0_i32 = arith.constant 0 : i32
    %c0_i32_0 = arith.constant 0 : i32
    %c0_i32_1 = arith.constant 0 : i32
    return %c0_i32, %c0_i32_0 : i32, i32
  }
  func.func @transform_2(%arg0: i32) -> (i32, i32) {
    %c0_i32 = arith.constant 0 : i32
    %c0_i32_0 = arith.constant 0 : i32
    %c0_i32_1 = arith.constant 0 : i32
    return %c0_i32, %c0_i32_0 : i32, i32
  }
  func.func @transform_3(%arg0: i32) -> (i32, i32) {
    %c0_i32 = arith.constant 0 : i32
    %c0_i32_0 = arith.constant 0 : i32
    %c0_i32_1 = arith.constant 0 : i32
    return %c0_i32, %c0_i32_0 : i32, i32
  }
  func.func @transform_4(%arg0: i32) -> (i32, i32, i32) {
    %c0_i32 = arith.constant 0 : i32
    %c0_i32_0 = arith.constant 0 : i32
    %c0_i32_1 = arith.constant 0 : i32
    %c0_i32_2 = arith.constant 0 : i32
    return %c0_i32, %c0_i32_0, %c0_i32_1 : i32, i32, i32
  }
  func.func @transform_5(%arg0: i32) -> (i32, i32) {
    %c0_i32 = arith.constant 0 : i32
    %c0_i32_0 = arith.constant 0 : i32
    %c0_i32_1 = arith.constant 0 : i32
    return %c0_i32, %c0_i32_0 : i32, i32
  }
  func.func @transform_6(%arg0: i32) -> (i32, i32, i32) {
    %c0_i32 = arith.constant 0 : i32
    %c0_i32_0 = arith.constant 0 : i32
    %c0_i32_1 = arith.constant 0 : i32
    %c0_i32_2 = arith.constant 0 : i32
    return %c0_i32, %c0_i32_0, %c0_i32_1 : i32, i32, i32
  }
  func.func @transform_7(%arg0: i32) -> (i32, i32) {
    %c0_i32 = arith.constant 0 : i32
    %c0_i32_0 = arith.constant 0 : i32
    %c0_i32_1 = arith.constant 0 : i32
    return %c0_i32, %c0_i32_0 : i32, i32
  }
  func.func @transform_8(%arg0: i32) -> (i32, i32) {
    %c0_i32 = arith.constant 0 : i32
    %c0_i32_0 = arith.constant 0 : i32
    return %arg0, %c0_i32 : i32, i32
  }
  func.func @transform_9(%arg0: i32) -> (i32, i32, i32) {
    %c0_i32 = arith.constant 0 : i32
    %c0_i32_0 = arith.constant 0 : i32
    %c0_i32_1 = arith.constant 0 : i32
    return %arg0, %c0_i32, %c0_i32_0 : i32, i32, i32
  }
}

</mosaic_0001>

<bundles_post_ra>
// kernel: tpu_custom_call.1
= control target key start
LH: loop header
LB: loop body
LE: loop exit
PB: predicated region body
PF: predicated region fallthrough
CT: control target
= control target key end

     0   :  { %14 = vsyncpa [#allocation3], 0  ;;  %s3246_s0 = inlined_call_operand.hbm [shape: f32[16,128], index: 0, kind: input, shape index: {}]   ;;  %s3247_s1 = inlined_call_operand.hbm [shape: f32[64,128], index: 1, kind: input, shape index: {}]   ;;  %s3248_s2 = inlined_call_operand.hbm [shape: f32[3,128], index: 2, kind: input, shape index: {}]   ;;  %s3249_s3 = inlined_call_operand.hbm [shape: f32[3,128], index: 3, kind: input, shape index: {}]   ;;  %s3250_s4 = inlined_call_operand.hbm [shape: bf16[3,128,128], index: 4, kind: input, shape index: {}]   ;;  %s3251_s5 = inlined_call_operand.vmem [shape: f32[3,128], index: 5, kind: input, shape index: {}]   ;;  %s3252_s6 = inlined_call_operand.hbm [shape: bf16[4,32,128], index: 6, kind: input, shape index: {}]   ;;  %s3253_s7 = inlined_call_operand.vmem [shape: f32[1,128], index: 7, kind: input, shape index: {}]   ;;  %s3254_s8 = inlined_call_operand.hbm [shape: f32[128,128], index: 8, kind: input, shape index: {}]   ;;  %s3255_s9 = inlined_call_operand.hbm [shape: f32[2,16,128], index: 9, kind: output, shape index: {}]  }
   0x1   :  { %15 = vsyncpa [#allocation6], 0 }
   0x2   :  { %16 = vsyncpa [#allocation9], 0 }
   0x3   :  { %17 = vsyncpa [#allocation12], 0 }
   0x4   :  { %18 = vsyncpa [#allocation4], 0  ;;  %s36_s11 = sshll.u32 %s3247_s1, 4  ;;  %s2447_s12 = smov [#allocation5]   ;;  %s37_s11 = int_to_ptr.hbm [resolvable:$true] %s36_s11 }
   0x5   :  { %s38_s13 = sshll.u32 %s2447_s12, 4  ;;  %s61_s16 = sshll.u32 %s3249_s3, 4  ;;  %s39_s13 = int_to_ptr.vmem [resolvable:$true] %s38_s13  ;;  %s62_s16 = int_to_ptr.hbm [resolvable:$true] %s61_s16 }
   0x6   :  { %s2448_s17 = smov 128   ;;  %s2449_s18 = smov 8  }
   0x7   :  { %44 = dma.hbm_to_vmem [thread:$0]  %s37_s11, 1024, %s39_s13, [#allocation6], %s2448_s17, %s2448_s17, %s2449_s18  }
   0x8   :  { %s2450_s19 = smov [#allocation8]   ;;  %s86_s22 = sshll.u32 %s3252_s6, 4  ;;  %s87_s22 = int_to_ptr.hbm [resolvable:$true] %s86_s22 }
   0x9   :  { %s63_s20 = sshll.u32 %s2450_s19, 4  ;;  %s2451_s23 = smov [#allocation11]   ;;  %s64_s20 = int_to_ptr.vmem [resolvable:$true] %s63_s20 }
   0xa   :  { %66 = dma.hbm_to_vmem [thread:$0]  %s62_s16, 64, %s64_s20, [#allocation9]  }
   0xb   :  { %s88_s24 = sshll.u32 %s2451_s23, 4  ;;  %s23_s26 = sshll.u32 %s3246_s0, 4  ;;  %s89_s24 = int_to_ptr.vmem [resolvable:$true] %s88_s24  ;;  %s24_s26 = int_to_ptr.hbm [resolvable:$true] %s23_s26 }
   0xc   :  { %s2452_s27 = smov 64   ;;  %s2453_s28 = smov 4  }
   0xd   :  { %94 = dma.hbm_to_vmem [thread:$0]  %s87_s22, 1024, %s89_s24, [#allocation12], %s2452_s27, %s2452_s27, %s2453_s28  }
   0xe   :  { %s2454_s29 = smov [#allocation2]   ;;  %s50_s6 = sshll.u32 %s3248_s2, 4  ;;  %s51_s6 = int_to_ptr.hbm [resolvable:$true] %s50_s6 }
   0xf   :  { %s25_s30 = sshll.u32 %s2454_s29, 4  ;;  %s71_s13 = sshll.u32 %s3250_s4, 4  ;;  %s26_s30 = int_to_ptr.vmem [resolvable:$true] %s25_s30  ;;  %s72_s13 = int_to_ptr.hbm [resolvable:$true] %s71_s13 }
  0x10   :  { %31 = dma.hbm_to_vmem [thread:$0]  %s24_s26, 256, %s26_s30, [#allocation3], %s2448_s17, %s2448_s17, %s2449_s18  }
  0x11   :  { %s2455_s14 = smov [#allocation7]   ;;  %s2456_s16 = smov [#allocation10]  }
  0x12   :  { %s52_s15 = sshll.u32 %s2455_s14, 4  ;;  %s73_s19 = sshll.u32 %s2456_s16, 4  ;;  %s53_s15 = int_to_ptr.vmem [resolvable:$true] %s52_s15  ;;  %s74_s19 = int_to_ptr.vmem [resolvable:$true] %s73_s19 }
  0x13   :  { %55 = dma.hbm_to_vmem [thread:$0]  %s51_s6, 64, %s53_s15, [#allocation6]  }
  0x14   :  { %s101_s2 = sshll.u32 %s3254_s8, 4  ;;  %s2457_s21 = smov [#allocation13]   ;;  %s102_s2 = int_to_ptr.hbm [resolvable:$true] %s101_s2 }
  0x15   :  { %79 = dma.hbm_to_vmem [thread:$0]  %s72_s13, 3072, %s74_s19, [#allocation9], %s2452_s27, %s2452_s27, %s2453_s28  }
  0x16   :  { %s103_s22 = sshll.u32 %s2457_s21, 4  ;;  %s104_s22 = int_to_ptr.vmem [resolvable:$true] %s103_s22 }
  0x17   :  { %109 = dma.hbm_to_vmem [thread:$0]  %s102_s2, 2048, %s104_s22, [#allocation12], %s2448_s17, %s2448_s17, %s2449_s18  }
  0x18   :  { %2437 = dma.done.wait [#allocation3], 256  }
  0x19   :  { %2438 = vsyncadd [#allocation3], 4294967040 }
  0x1a   :  { %2439 = dma.done.wait [#allocation6], 1088  }
  0x1b   :  { %2440 = vsyncadd [#allocation6], 4294966208 }
  0x1c   :  { %2441 = dma.done.wait [#allocation9], 3136  }
  0x1d   :  { %2442 = vsyncadd [#allocation9], 4294964160 }
  0x1e   :  { %2443 = dma.done.wait [#allocation12], 3072  }
  0x1f   :  { %2444 = vsyncadd [#allocation12], 4294964224  ;;  %v199_v0 = vld [vmem:[#allocation5 + $0x10] sm:$0xff]  ;;  %v197_v1 = vld [vmem:[#allocation5] sm:$0xff]  ;;  %v2458_v7 = vmov 128.0   ;;  %s2459_s23 = smov 96  }
  0x20   :  { %211 = vadd.xlane.f32.xlu1 %v199_v0  ;;  %207 = vadd.xlane.f32.xlu0 %v197_v1  ;;  %v201_v2 = vld [vmem:[#allocation5 + $0x20] sm:$0xff]  ;;  %v200_v3 = vld [vmem:[#allocation5 + $0x18] sm:$0xff]  ;;  %v198_v4 = vld [vmem:[#allocation5 + $0x8] sm:$0xff]  ;;  %2159 = vrcp.f32 %v2458_v7  ;;  %s2460_s25 = smov 32   ;;  %s1898_s11 = sshll.u32 %s3255_s9, 4  ;;  %s1899_s11 = int_to_ptr.hbm [resolvable:$true] %s1898_s11 }
  0x21   :  { %215 = vadd.xlane.f32.xlu2 %v201_v2  ;;  %v202_v5 = vld [vmem:[#allocation5 + $0x28] sm:$0xff]  ;;  %v203_v6 = vld [vmem:[#allocation5 + $0x30] sm:$0xff]  ;;  %v204_v27 = vld [vmem:[#allocation5 + $0x38] sm:$0xff] }
  0x22   :  { %v139_v35 = vld [vmem:[#allocation2] sm:$0xff]  ;;  %v2578_v41 = vld [vmem:[#allocation2 + $0x8] sm:$0xff]  ;;  %v2109_v45 = vld [vmem:[#allocation10 + $0x78] sm:$0xff] }
  0x23   :  { %536 = vmatpush.bf16.msra.mxu1 %v2109_v45  ;;  %v2108_v46 = vld [vmem:[#allocation10 + $0x70] sm:$0xff]  ;;  %v2107_v47 = vld [vmem:[#allocation10 + $0x68] sm:$0xff]  ;;  %v2106_v48 = vld [vmem:[#allocation10 + $0x60] sm:$0xff] }
  0x24   :  { %v2105_v49 = vld [vmem:[#allocation10 + $0x58] sm:$0xff]  ;;  %v2104_v50 = vld [vmem:[#allocation10 + $0x50] sm:$0xff]  ;;  %v2103_v51 = vld [vmem:[#allocation10 + $0x48] sm:$0xff] }
  0x25   :  { %v2102_v55 = vld [vmem:[#allocation10 + $0x40] sm:$0xff] }
  0x26   :  { %v2160_v8 = vpop.eup %2159 }
  0x27   :  { %v148_v9 = vmul.f32 128.0, %v2160_v8  ;;  %vm152_vm0 = vweird.f32 %v2160_v8  ;;  %537 = vmatpush.bf16.msra.mxu1 %v2108_v46 }
  0x28   :  { %213 = vadd.xlane.f32.xlu1 %v200_v3  ;;  %209 = vadd.xlane.f32.xlu0 %v198_v4 }
  0x29   :  { %217 = vadd.xlane.f32.xlu2 %v202_v5  ;;  %v149_v10 = vsub.f32 1.0, %v148_v9 }
  0x2b   :  { %v150_v11 = vmul.f32 %v2160_v8, %v149_v10  ;;  %538 = vmatpush.bf16.msra.mxu1 %v2107_v47  ;;  %v2634_v47 = vld [vmem:[#allocation7 + $0x1] ss:$0 sm:$0xff] }
  0x2d   :  { %v151_v12 = vadd.f32 %v2160_v8, %v150_v11 }
  0x2f   :  { %v2546_v13 = vsel %vm152_vm0, %v2160_v8, %v151_v12  ;;  %539 = vmatpush.bf16.msra.mxu1 %v2106_v48  ;;  %v2636_v48 = vld [vmem:[#allocation13 + $0x18] sm:$0xff] }
  0x31   :  { %219 = vadd.xlane.f32.xlu2 %v203_v6 }
  0x33   :  { %540 = vmatpush.bf16.msra.mxu1 %v2105_v49 }
  0x37   :  { %541 = vmatpush.bf16.msra.mxu1 %v2104_v50 }
  0x3b   :  { %542 = vmatpush.bf16.msra.mxu1 %v2103_v51 }
  0x3f   :  { %543 = vmatpush.bf16.msra.mxu1 %v2102_v55 }
  0x93   :  { %v212_v14 = vpop.xlane.xlu1 %211  ;;  %v208_v15 = vpop.xlane.xlu0 %207 }
  0x94   :  { %v223_v16 = vmul.f32 %v208_v15, %v2546_v13  ;;  %v216_v19 = vpop.xlane.xlu2 %215  ;;  %v225_v30 = vmul.f32 %v212_v14, %v2546_v13 }
  0x95   :  { %v227_v26 = vmul.f32 %v216_v19, %v2546_v13  ;;  %v2606_v19 = vld [vmem:[#allocation13] sm:$0xff] }
  0x96   :  { %v2549_v17 = vsub.f32 %v197_v1, %v223_v16  ;;  %v2567_v33 = vsub.f32 %v199_v0, %v225_v30 }
  0x97   :  { %v2565_v31 = vsub.f32 %v201_v2, %v227_v26 }
  0x98   :  { %v239_v18 = vmul.f32 %v2549_v17, %v2549_v17  ;;  %v241_v37 = vmul.f32 %v2567_v33, %v2567_v33 }
  0x99   :  { %v243_v34 = vmul.f32 %v2565_v31, %v2565_v31 }
  0x9a   :  { %247 = vadd.xlane.f32.xlu0 %v239_v18 }
  0x9b   :  { %v214_v20 = vpop.xlane.xlu1 %213  ;;  %v210_v21 = vpop.xlane.xlu0 %209 }
  0x9c   :  { %v226_v22 = vmul.f32 %v214_v20, %v2546_v13  ;;  %v224_v23 = vmul.f32 %v210_v21, %v2546_v13  ;;  %v218_v32 = vpop.xlane.xlu2 %217 }
  0x9d   :  { %v228_v36 = vmul.f32 %v218_v32, %v2546_v13 }
  0x9e   :  { %v2555_v24 = vsub.f32 %v200_v3, %v226_v22  ;;  %v2557_v25 = vsub.f32 %v198_v4, %v224_v23 }
  0x9f   :  { %v2574_v38 = vsub.f32 %v202_v5, %v228_v36 }
  0xa0   :  { %v242_v28 = vmul.f32 %v2555_v24, %v2555_v24  ;;  %v240_v29 = vmul.f32 %v2557_v25, %v2557_v25 }
  0xa1   :  { %v244_v40 = vmul.f32 %v2574_v38, %v2574_v38 }
  0xa2   :  { %253 = vadd.xlane.f32.xlu2 %v242_v28  ;;  %221 = vadd.xlane.f32.xlu0 %v204_v27 }
  0xa3   :  { %249 = vadd.xlane.f32.xlu1 %v240_v29 }
  0xa4   :  { %v220_v39 = vpop.xlane.xlu2 %219 }
  0xa5   :  { %v229_v42 = vmul.f32 %v220_v39, %v2546_v13 }
  0xa7   :  { %v2582_v43 = vsub.f32 %v203_v6, %v229_v42 }
  0xa9   :  { %v245_v44 = vmul.f32 %v2582_v43, %v2582_v43 }
  0xaa   :  { %255 = vadd.xlane.f32.xlu0 %v243_v34  ;;  %143 = vadd.xlane.f32.xlu2 %v139_v35 }
  0xab   :  { %251 = vadd.xlane.f32.xlu1 %v241_v37 }
  0xb2   :  { %145 = vadd.xlane.f32.xlu0 %v2578_v41 }
  0xb3   :  { %257 = vadd.xlane.f32.xlu1 %v244_v40 }
  0xbb   :  { %259 = vadd.xlane.f32.xlu1 %v245_v44  ;;  %v2678_v44 = vld [vmem:[#allocation13 + $0x20] sm:$0xff] }
 0x10d   :  { %v248_v52 = vpop.xlane.xlu0 %247 }
 0x10e   :  { %v263_v53 = vmul.f32 %v248_v52, %v2546_v13  ;;  %v2641_v52 = vld [vmem:[#allocation13 + $0x8] sm:$0xff] }
 0x110   :  { %v271_v54 = vadd.f32 1e-06, %v263_v53 }
 0x112   :  { %2161 = vrsqrt.f32 %v271_v54  ;;  %vm285_vm2 = vweird.f32 %v271_v54 }
 0x115   :  { %v254_v56 = vpop.xlane.xlu2 %253  ;;  %v222_v57 = vpop.xlane.xlu0 %221 }
 0x116   :  { %v266_v58 = vmul.f32 %v254_v56, %v2546_v13  ;;  %v250_v59 = vpop.xlane.xlu1 %249  ;;  %v230_v60 = vmul.f32 %v222_v57, %v2546_v13  ;;  %v2649_v56 = vld [vmem:[#allocation8 + $0x1] ss:$0 sm:$0xff] }
 0x117   :  { %v264_v61 = vmul.f32 %v250_v59, %v2546_v13 }
 0x118   :  { %v2162_v62 = vpop.eup %2161  ;;  %v2590_v63 = vadd.f32 1e-06, %v266_v58  ;;  %v2592_v0 = vsub.f32 %v204_v27, %v230_v60 }
 0x119   :  { %v280_v1 = vmul.f32 %v2162_v62, %v271_v54  ;;  %v272_v2 = vadd.f32 1e-06, %v264_v61  ;;  %vm286_vm1 = vweird.f32 %v2162_v62 }
 0x11a   :  { %2163 = vrsqrt.f32 %v2590_v63  ;;  %v246_v3 = vmul.f32 %v2592_v0, %v2592_v0  ;;  %vm2614_vm3 = vmor %vm285_vm2, %vm286_vm1  ;;  %vm315_vm7 = vweird.f32 %v2590_v63 }
 0x11b   :  { %v281_v4 = vmul.f32 %v2162_v62, %v280_v1  ;;  %2165 = vrsqrt.f32 %v272_v2  ;;  %vm295_vm4 = vweird.f32 %v272_v2 }
 0x11c   :  { %261 = vadd.xlane.f32.xlu2 %v246_v3 }
 0x11d   :  { %v282_v5 = vmul.f32 0.5, %v281_v4  ;;  %v256_v6 = vpop.xlane.xlu0 %255  ;;  %v144_v7 = vpop.xlane.xlu2 %143 }
 0x11e   :  { %v252_v8 = vpop.xlane.xlu1 %251  ;;  %v154_v9 = vmul.f32 %v2546_v13, %v144_v7  ;;  %v267_v18 = vmul.f32 %v256_v6, %v2546_v13 }
 0x11f   :  { %v283_v10 = vsub.f32 1.5, %v282_v5  ;;  %v265_v11 = vmul.f32 %v252_v8, %v2546_v13 }
 0x120   :  { %v2599_v12 = vpop.eup %2163  ;;  %v2601_v14 = vsub.f32 %v139_v35, %v154_v9  ;;  %v2618_v28 = vadd.f32 1e-06, %v267_v18 }
 0x121   :  { %v2166_v15 = vpop.eup %2165  ;;  %v2603_v16 = vadd.f32 1e-06, %v265_v11  ;;  %v284_v20 = vmul.f32 %v2162_v62, %v283_v10  ;;  %v310_v21 = vmul.f32 %v2599_v12, %v2590_v63  ;;  %vm316_vm9 = vweird.f32 %v2599_v12 }
 0x122   :  { %v290_v22 = vmul.f32 %v2166_v15, %v272_v2  ;;  %v158_v23 = vmul.f32 %v2601_v14, %v2601_v14  ;;  %vm296_vm5 = vweird.f32 %v2166_v15  ;;  %v2657_v2 = vld [vmem:[#allocation13 + $0x10] sm:$0xff]  ;;  %vm317_vm12 = vmor %vm315_vm7, %vm316_vm9  ;;  %vm325_vm1 = vweird.f32 %v2618_v28 }
 0x123   :  { %2167 = vrsqrt.f32 %v2603_v16  ;;  %v311_v30 = vmul.f32 %v2599_v12, %v310_v21  ;;  %v288_v36 = vsel %vm2614_vm3, %v2162_v62, %v284_v20  ;;  %vm2628_vm6 = vmor %vm295_vm4, %vm296_vm5  ;;  %vm305_vm10 = vweird.f32 %v2603_v16 }
 0x124   :  { %v291_v26 = vmul.f32 %v2166_v15, %v290_v22  ;;  %858 = vadd.xlane.f32.xlu2 %v2606_v19  ;;  %160 = vadd.xlane.f32.xlu0 %v158_v23  ;;  %2169 = vrsqrt.f32 %v2618_v28  ;;  %v359_v46 = vmul.f32 %v288_v36, %v2549_v17 }
 0x125   :  { %v146_v29 = vpop.xlane.xlu0 %145  ;;  %v312_v49 = vmul.f32 0.5, %v311_v30 }
 0x126   :  { %v292_v32 = vmul.f32 0.5, %v291_v26  ;;  %v258_v34 = vpop.xlane.xlu1 %257  ;;  %v155_v35 = vmul.f32 %v2546_v13, %v146_v29  ;;  %v368_v55 = vmul.f32 %v2634_v47, %v359_v46  ;;  %v2685_v46 = vld [vmem:[#allocation13 + $0x28] sm:$0xff] }
 0x127   :  { %v268_v37 = vmul.f32 %v258_v34, %v2546_v13  ;;  %v313_v57 = vsub.f32 1.5, %v312_v49  ;;  %v2101_v49 = vld [vmem:[#allocation10 + $0x38] sm:$0xff] }
 0x128   :  { %v293_v39 = vsub.f32 1.5, %v292_v32  ;;  %v2626_v40 = vsub.f32 %v2578_v41, %v155_v35  ;;  %455 = vmatpush.bf16.msra.mxu0 %v2101_v49 }
 0x129   :  { %v2168_v42 = vpop.eup %2167  ;;  %v276_v45 = vadd.f32 1e-06, %v268_v37  ;;  %v314_v3 = vmul.f32 %v2599_v12, %v313_v57 }
 0x12a   :  { %v294_v50 = vmul.f32 %v2166_v15, %v293_v39  ;;  %v300_v51 = vmul.f32 %v2168_v42, %v2603_v16  ;;  %v159_v41 = vmul.f32 %v2626_v40, %v2626_v40  ;;  %v2170_v59 = vpop.eup %2169  ;;  %vm306_vm8 = vweird.f32 %v2168_v42 }
 0x12b   :  { %2171 = vrsqrt.f32 %v276_v45  ;;  %v320_v5 = vmul.f32 %v2170_v59, %v2618_v28  ;;  %vm307_vm11 = vmor %vm305_vm10, %vm306_vm8  ;;  %v318_v11 = vsel %vm317_vm12, %v2599_v12, %v314_v3  ;;  %vm335_vm13 = vweird.f32 %v276_v45  ;;  %v2095_v3 = vld [vmem:[#allocation10 + $0x8] sm:$0xff] }
 0x12c   :  { %v301_v53 = vmul.f32 %v2168_v42, %v300_v51  ;;  %162 = vadd.xlane.f32.xlu1 %v159_v41  ;;  %v298_v54 = vsel %vm2628_vm6, %v2166_v15, %v294_v50  ;;  %864 = vadd.xlane.f32.xlu2 %v2636_v48  ;;  %v362_v18 = vmul.f32 %v318_v11, %v2555_v24  ;;  %vm326_vm0 = vweird.f32 %v2170_v59  ;;  %v2100_v50 = vld [vmem:[#allocation10 + $0x30] sm:$0xff] }
 0x12d   :  { %860 = vadd.xlane.f32.xlu0 %v2641_v52  ;;  %v360_v17 = vmul.f32 %v298_v54, %v2557_v25  ;;  %v377_v25 = vadd.f32 %v2649_v56, %v368_v55  ;;  %v321_v10 = vmul.f32 %v2170_v59, %v320_v5  ;;  %vm327_vm2 = vmor %vm325_vm1, %vm326_vm0  ;;  %456 = vmatpush.bf16.msra.mxu0 %v2100_v50  ;;  %v2688_v41 = vld [vmem:[#allocation13 + $0x30] sm:$0xff] }
 0x12e   :  { %v302_v58 = vmul.f32 0.5, %v301_v53  ;;  %v371_v23 = vmul.f32 %v2634_v47, %v362_v18  ;;  %v260_v28 = vpop.xlane.xlu1 %259  ;;  %v2099_v53 = vld [vmem:[#allocation10 + $0x28] sm:$0xff]  ;;  %v2094_v18 = vld [vmem:[#allocation10] sm:$0xff] }
 0x12f   :  { %v369_v60 = vmul.f32 %v2634_v47, %v360_v17  ;;  %v322_v20 = vmul.f32 0.5, %v321_v10  ;;  %v2098_v17 = vld [vmem:[#allocation10 + $0x20] sm:$0xff] }
 0x130   :  { %v303_v61 = vsub.f32 1.5, %v302_v58  ;;  %v380_v12 = vadd.f32 %v2649_v56, %v371_v23 }
 0x131   :  { %v2172_v62 = vpop.eup %2171  ;;  %v378_v1 = vadd.f32 %v2649_v56, %v369_v60  ;;  %v323_v26 = vsub.f32 1.5, %v322_v20  ;;  %457 = vmatpush.bf16.msra.mxu0 %v2099_v53 }
 0x132   :  { %v304_v4 = vmul.f32 %v2168_v42, %v303_v61  ;;  %v330_v6 = vmul.f32 %v2172_v62, %v276_v45  ;;  %vm336_vm14 = vweird.f32 %v2172_v62  ;;  %v2681_v45 = vld [vmem:[#allocation13 + $0x38] sm:$0xff] }
 0x133   :  { %v385_v7 = vpack.c.bf16 %v378_v1, %v377_v25  ;;  %vm337_vm15 = vmor %vm335_vm13, %vm336_vm14  ;;  %v324_v29 = vmul.f32 %v2170_v59, %v323_v26 }
 0x134   :  { %v331_v8 = vmul.f32 %v2172_v62, %v330_v6  ;;  %862 = vadd.xlane.f32.xlu1 %v2657_v2  ;;  %v308_v9 = vsel %vm307_vm11, %v2168_v42, %v304_v4  ;;  %868 = vadd.xlane.f32.xlu2 %v2685_v46 }
 0x135   :  { %544 = vmatmul.bf16.vlgmr.msra.gmra.mxu1 %v385_v7  ;;  %v361_v15 = vmul.f32 %v308_v9, %v2567_v33  ;;  %v328_v30 = vsel %vm327_vm2, %v2170_v59, %v324_v29  ;;  %872 = vadd.xlane.f32.xlu0 %v2681_v45  ;;  %v2097_v59 = vld [vmem:[#allocation10 + $0x18] sm:$0xff] }
 0x136   :  { %v332_v16 = vmul.f32 0.5, %v331_v8  ;;  %v363_v34 = vmul.f32 %v328_v30, %v2565_v31  ;;  %458 = vmatpush.bf16.msra.mxu0 %v2098_v17 }
 0x137   :  { %v370_v21 = vmul.f32 %v2634_v47, %v361_v15 }
 0x138   :  { %v333_v22 = vsub.f32 1.5, %v332_v16  ;;  %v372_v36 = vmul.f32 %v2634_v47, %v363_v34 }
 0x139   :  { %v379_v63 = vadd.f32 %v2649_v56, %v370_v21 }
 0x13a   :  { %v334_v27 = vmul.f32 %v2172_v62, %v333_v22  ;;  %v381_v39 = vadd.f32 %v2649_v56, %v372_v36  ;;  %459 = vmatpush.bf16.msra.mxu0 %v2097_v59 }
 0x13b   :  { %v386_v33 = vpack.c.bf16 %v380_v12, %v379_v63 }
 0x13c   :  { %v338_v24 = vsel %vm337_vm15, %v2172_v62, %v334_v27  ;;  %866 = vadd.xlane.f32.xlu1 %v2678_v44  ;;  %v2096_v62 = vld [vmem:[#allocation10 + $0x10] sm:$0xff]  ;;  %vm600_vm15 = vcmask 261120  }
 0x13d   :  { %v364_v32 = vmul.f32 %v338_v24, %v2574_v38  ;;  %v269_v38 = vmul.f32 %v260_v28, %v2546_v13 }
 0x13e   :  { %460 = vmatpush.bf16.msra.mxu0 %v2096_v62 }
 0x13f   :  { %v373_v35 = vmul.f32 %v2634_v47, %v364_v32  ;;  %v277_v31 = vadd.f32 1e-06, %v269_v38 }
 0x141   :  { %v382_v37 = vadd.f32 %v2649_v56, %v373_v35  ;;  %2173 = vrsqrt.f32 %v277_v31  ;;  %vm345_vm3 = vweird.f32 %v277_v31 }
 0x142   :  { %461 = vmatpush.bf16.msra.mxu0 %v2095_v3  ;;  %v2151_v3 = vld [vmem:[%s3251_s5 + $0x1] ss:$0 sm:$0xff] }
 0x143   :  { %v387_v42 = vpack.c.bf16 %v382_v37, %v381_v39 }
 0x144   :  { %870 = vadd.xlane.f32.xlu1 %v2688_v41 }
 0x145   :  { %549 = vmatmul.bf16.gmra.mxu1 %v386_v33 }
 0x146   :  { %462 = vmatpush.bf16.msra.mxu0 %v2094_v18 }
 0x147   :  { %v2174_v51 = vpop.eup %2173 }
 0x148   :  { %v340_v54 = vmul.f32 %v2174_v51, %v277_v31  ;;  %vm346_vm4 = vweird.f32 %v2174_v51 }
 0x149   :  { %vm2697_vm5 = vmor %vm345_vm3, %vm346_vm4 }
 0x14a   :  { %v341_v55 = vmul.f32 %v2174_v51, %v340_v54 }
 0x14c   :  { %v342_v60 = vmul.f32 0.5, %v341_v55 }
 0x14e   :  { %v343_v25 = vsub.f32 1.5, %v342_v60 }
 0x150   :  { %v344_v8 = vmul.f32 %v2174_v51, %v343_v25  ;;  %v2152_v25 = vld [vmem:[#allocation7] ss:$0 sm:$0xff] }
 0x152   :  { %v348_v21 = vsel %vm2697_vm5, %v2174_v51, %v344_v8 }
 0x153   :  { %v365_v12 = vmul.f32 %v348_v21, %v2582_v43 }
 0x155   :  { %554 = vmatmul.bf16.gmra.mxu1 %v387_v42  ;;  %v374_v36 = vmul.f32 %v2634_v47, %v365_v12 }
 0x157   :  { %v383_v31 = vadd.f32 %v2649_v56, %v374_v36 }
 0x18f   :  { %v262_v57 = vpop.xlane.xlu2 %261 }
 0x190   :  { %v270_v58 = vmul.f32 %v262_v57, %v2546_v13 }
 0x192   :  { %v278_v61 = vadd.f32 1e-06, %v270_v58 }
 0x194   :  { %2175 = vrsqrt.f32 %v278_v61  ;;  %vm355_vm7 = vweird.f32 %v278_v61 }
 0x197   :  { %v859_v1 = vpop.xlane.xlu2 %858  ;;  %v161_v4 = vpop.xlane.xlu0 %160 }
 0x198   :  { %v890_v5 = vmul.f32 %v859_v1, %v2546_v13  ;;  %v164_v6 = vmul.f32 %v161_v4, %v2546_v13 }
 0x19a   :  { %v2176_v7 = vpop.eup %2175  ;;  %v2695_v9 = vsub.f32 %v2606_v19, %v890_v5  ;;  %v166_v15 = vadd.f32 1e-06, %v164_v6  ;;  %v2153_v6 = vld [vmem:[#allocation8] ss:$0 sm:$0xff] }
 0x19b   :  { %v350_v11 = vmul.f32 %v2176_v7, %v278_v61  ;;  %vm356_vm6 = vweird.f32 %v2176_v7 }
 0x19c   :  { %v922_v16 = vmul.f32 %v2695_v9, %v2695_v9  ;;  %2177 = vrsqrt.f32 %v166_v15  ;;  %vm357_vm8 = vmor %vm355_vm7, %vm356_vm6  ;;  %vm174_vm9 = vweird.f32 %v166_v15 }
 0x19d   :  { %v351_v20 = vmul.f32 %v2176_v7, %v350_v11 }
 0x19e   :  { %938 = vadd.xlane.f32.xlu0 %v922_v16 }
 0x19f   :  { %v352_v19 = vmul.f32 0.5, %v351_v20  ;;  %v163_v22 = vpop.xlane.xlu1 %162  ;;  %v865_v42 = vpop.xlane.xlu2 %864 }
 0x1a0   :  { %v165_v23 = vmul.f32 %v163_v22, %v2546_v13  ;;  %v861_v26 = vpop.xlane.xlu0 %860  ;;  %v893_v54 = vmul.f32 %v865_v42, %v2546_v13 }
 0x1a1   :  { %v353_v63 = vsub.f32 1.5, %v352_v19  ;;  %v891_v27 = vmul.f32 %v861_v26, %v2546_v13 }
 0x1a2   :  { %v167_v29 = vadd.f32 1e-06, %v165_v23  ;;  %v2178_v33 = vpop.eup %2177  ;;  %v2726_v58 = vsub.f32 %v2636_v48, %v893_v54 }
 0x1a3   :  { %v354_v24 = vmul.f32 %v2176_v7, %v353_v63  ;;  %v2709_v30 = vsub.f32 %v2641_v52, %v891_v27  ;;  %v169_v32 = vmul.f32 %v2178_v33, %v166_v15  ;;  %vm175_vm10 = vweird.f32 %v2178_v33 }
 0x1a4   :  { %2179 = vrsqrt.f32 %v167_v29  ;;  %vm176_vm11 = vmor %vm174_vm9, %vm175_vm10  ;;  %v925_v61 = vmul.f32 %v2726_v58, %v2726_v58  ;;  %vm184_vm13 = vweird.f32 %v167_v29 }
 0x1a5   :  { %v923_v34 = vmul.f32 %v2709_v30, %v2709_v30  ;;  %v358_v35 = vsel %vm357_vm8, %v2176_v7, %v354_v24  ;;  %v170_v37 = vmul.f32 %v2178_v33, %v169_v32 }
 0x1a6   :  { %v366_v39 = vmul.f32 %v358_v35, %v2592_v0 }
 0x1a7   :  { %940 = vadd.xlane.f32.xlu2 %v923_v34  ;;  %v863_v43 = vpop.xlane.xlu1 %862  ;;  %v171_v28 = vmul.f32 0.5, %v170_v37 }
 0x1a8   :  { %v892_v38 = vmul.f32 %v863_v43, %v2546_v13  ;;  %v375_v52 = vmul.f32 %v2634_v47, %v366_v39 }
 0x1a9   :  { %v172_v50 = vsub.f32 1.5, %v171_v28 }
 0x1aa   :  { %v2180_v49 = vpop.eup %2179  ;;  %v2719_v51 = vsub.f32 %v2657_v2, %v892_v38  ;;  %v384_v53 = vadd.f32 %v2649_v56, %v375_v52 }
 0x1ab   :  { %v179_v0 = vmul.f32 %v2180_v49, %v167_v29  ;;  %v173_v17 = vmul.f32 %v2178_v33, %v172_v50  ;;  %vm185_vm12 = vweird.f32 %v2180_v49 }
 0x1ac   :  { %v924_v55 = vmul.f32 %v2719_v51, %v2719_v51  ;;  %v388_v57 = vpack.c.bf16 %v384_v53, %v383_v31  ;;  %vm186_vm14 = vmor %vm184_vm13, %vm185_vm12 }
 0x1ad   :  { %v180_v47 = vmul.f32 %v2180_v49, %v179_v0  ;;  %v177_v59 = vsel %vm176_vm11, %v2178_v33, %v173_v17 }
 0x1ae   :  { %942 = vadd.xlane.f32.xlu1 %v924_v55  ;;  %559 = vmatmul.bf16.gmra.mxu1 %v388_v57  ;;  %v188_v62 = vmul.f32 %v177_v59, %v2601_v14 }
 0x1af   :  { %v181_v2 = vmul.f32 0.5, %v180_v47  ;;  %v867_v38 = vpop.xlane.xlu1 %866 }
 0x1b0   :  { %v191_v5 = vmul.f32 %v2152_v25, %v188_v62  ;;  %v894_v52 = vmul.f32 %v867_v38, %v2546_v13 }
 0x1b1   :  { %v182_v56 = vsub.f32 1.5, %v181_v2 }
 0x1b2   :  { %v545_v60 = vpop.f32.mrf.mxu1  ;;  %v194_v11 = vadd.f32 %v2153_v6, %v191_v5  ;;  %v2749_v31 = vsub.f32 %v2678_v44, %v894_v52  ;;  %v2154_v44 = vld [vmem:[%s3251_s5] ss:$0 sm:$0xff] }
 0x1b3   :  { %v183_v1 = vmul.f32 %v2180_v49, %v182_v56  ;;  %v546_v7 = vadd.f32 %v2151_v3, %v545_v60 }
 0x1b5   :  { %v187_v48 = vsel %vm186_vm14, %v2180_v49, %v183_v1  ;;  %v567_v14 = vpack.c.bf16 %v546_v7, %v546_v7  ;;  %v926_v49 = vmul.f32 %v2749_v31, %v2749_v31 }
 0x1b6   :  { %944 = vadd.xlane.f32.xlu1 %v925_v61  ;;  %v189_v4 = vmul.f32 %v187_v48, %v2626_v40  ;;  %v873_v61 = vpop.xlane.xlu0 %872 }
 0x1b7   :  { %v588_v21 = vunpack.c.l.b16 %v567_v14  ;;  %v2789_v14 = vld [vmem:[#allocation13 + $0x58] sm:$0xff] }
 0x1b8   :  { %v192_v8 = vmul.f32 %v2152_v25, %v189_v4  ;;  %v897_v25 = vmul.f32 %v873_v61, %v2546_v13 }
 0x1ba   :  { %v547_v10 = vpop.f32.mrf.mxu1  ;;  %v195_v15 = vadd.f32 %v2153_v6, %v192_v8  ;;  %v2770_v5 = vsub.f32 %v2681_v45, %v897_v25 }
 0x1bb   :  { %v548_v16 = vadd.f32 %v2151_v3, %v547_v10 }
 0x1bc   :  { %v196_v18 = vpack.c.bf16 %v195_v15, %v194_v11  ;;  %v929_v11 = vmul.f32 %v2770_v5, %v2770_v5  ;;  %v2784_v15 = vld [vmem:[#allocation13 + $0x48] sm:$0xff] }
 0x1bd   :  { %v568_v20 = vpack.c.bf16 %v548_v16, %v548_v16  ;;  %v871_v16 = vpop.xlane.xlu1 %870 }
 0x1be   :  { %463 = vmatmul.bf16.vlgmr.msra.gmra.mxu0 %v196_v18  ;;  %v896_v18 = vmul.f32 %v871_v16, %v2546_v13 }
 0x1bf   :  { %v589_v19 = vunpack.c.l.b16 %v568_v20 }
 0x1c0   :  { %v2794_v20 = vsub.f32 %v2688_v41, %v896_v18 }
 0x1c1   :  { %v2735_v22 = vpack.c.b16 %v589_v19, %v588_v21  ;;  %v869_v19 = vpop.xlane.xlu2 %868 }
 0x1c2   :  { %v550_v23 = vpop.f32.mrf.mxu1  ;;  %v928_v21 = vmul.f32 %v2794_v20, %v2794_v20 }
 0x1c3   :  { %656 = vrot.lane.b32.xlu0 %v2735_v22, %s2459_s23  ;;  %v551_v40 = vadd.f32 %v2151_v3, %v550_v23  ;;  %v605_v45 = vsel %vm600_vm15, %v2735_v22, 0  ;;  %v895_v23 = vmul.f32 %v869_v19, %v2546_v13 }
 0x1c5   :  { %v569_v63 = vpack.c.bf16 %v551_v40, %v551_v40  ;;  %v2800_v40 = vsub.f32 %v2685_v46, %v895_v23  ;;  %v2115_v23 = vld [vmem:[#allocation10 + $0xa8] sm:$0xff] }
 0x1c7   :  { %v590_v29 = vunpack.c.l.b16 %v569_v63  ;;  %v2806_v63 = vld [vmem:[#allocation13 + $0x60] sm:$0xff] }
 0x1ca   :  { %v552_v26 = vpop.f32.mrf.mxu1 }
 0x1cb   :  { %v553_v27 = vadd.f32 %v2151_v3, %v552_v26  ;;  %v927_v26 = vmul.f32 %v2800_v40, %v2800_v40 }
 0x1cd   :  { %v570_v12 = vpack.c.bf16 %v553_v27, %v553_v27 }
 0x1cf   :  { %v591_v33 = vunpack.c.l.b16 %v570_v12  ;;  %v2811_v12 = vld [vmem:[#allocation13 + $0x68] sm:$0xff] }
 0x1d1   :  { %v2739_v24 = vpack.c.b16 %v591_v33, %v590_v29 }
 0x1d2   :  { %v555_v32 = vpop.f32.mrf.mxu1 }
 0x1d3   :  { %v556_v34 = vadd.f32 %v2151_v3, %v555_v32  ;;  %v608_v10 = vsel %vm600_vm15, %v2739_v24, 0  ;;  %v2814_v32 = vld [vmem:[#allocation13 + $0x50] sm:$0xff] }
 0x1d5   :  { %v571_v36 = vpack.c.bf16 %v556_v34, %v556_v34 }
 0x1d7   :  { %v592_v43 = vunpack.c.l.b16 %v571_v36 }
 0x1da   :  { %v557_v35 = vpop.f32.mrf.mxu1 }
 0x1db   :  { %v558_v37 = vadd.f32 %v2151_v3, %v557_v35 }
 0x1dd   :  { %v572_v39 = vpack.c.bf16 %v558_v37, %v558_v37 }
 0x1df   :  { %v593_v42 = vunpack.c.l.b16 %v572_v39  ;;  %v2818_v39 = vld [vmem:[#allocation13 + $0x78] sm:$0xff] }
 0x1e1   :  { %v2741_v28 = vpack.c.b16 %v593_v42, %v592_v43 }
 0x1e3   :  { %722 = vrot.lane.b32.xlu0 %v2741_v28, %s2452_s27  ;;  %660 = vrot.lane.b32.xlu1 %v2741_v28, %s2459_s23  ;;  %v611_v48 = vsel %vm600_vm15, %v2741_v28, 0 }
 0x20d   :  { %946 = vadd.xlane.f32.xlu1 %v926_v49 }
 0x211   :  { %v939_v41 = vpop.xlane.xlu0 %938 }
 0x212   :  { %v970_v52 = vmul.f32 %v939_v41, %v2546_v13 }
 0x21a   :  { %v941_v34 = vpop.xlane.xlu2 %940 }
 0x21b   :  { %v971_v43 = vmul.f32 %v941_v34, %v2546_v13 }
 0x21d   :  { %v987_v49 = vadd.f32 1e-06, %v971_v43 }
 0x21f   :  { %2181 = vrsqrt.f32 %v987_v49  ;;  %vm1018_vm0 = vweird.f32 %v987_v49 }
 0x221   :  { %v943_v27 = vpop.xlane.xlu1 %942 }
 0x222   :  { %v972_v25 = vmul.f32 %v943_v27, %v2546_v13 }
 0x226   :  { %720 = vrot.lane.b32.xlu1 %v2739_v24, %s2452_s27 }
 0x229   :  { %v945_v29 = vpop.xlane.xlu1 %944 }
 0x22b   :  { %v560_v50 = vpop.f32.mrf.mxu1 }
 0x22c   :  { %v561_v53 = vadd.f32 %v2151_v3, %v560_v50 }
 0x22e   :  { %v573_v0 = vpack.c.bf16 %v561_v53, %v561_v53 }
 0x230   :  { %v594_v57 = vunpack.c.l.b16 %v573_v0  ;;  %v986_v0 = vadd.f32 1e-06, %v970_v52  ;;  %v2113_v52 = vld [vmem:[#allocation10 + $0x98] sm:$0xff] }
 0x232   :  { %2183 = vrsqrt.f32 %v986_v0  ;;  %vm1008_vm2 = vweird.f32 %v986_v0 }
 0x233   :  { %v562_v54 = vpop.f32.mrf.mxu1 }
 0x234   :  { %v563_v17 = vadd.f32 %v2151_v3, %v562_v54 }
 0x235   :  { %v657_v46 = vpop.permute.xlu0 %656 }
 0x236   :  { %v574_v55 = vpack.c.bf16 %v563_v17, %v563_v17 }
 0x238   :  { %v595_v47 = vunpack.c.l.b16 %v574_v55  ;;  %v2827_v55 = vld [vmem:[#allocation13 + $0x40] sm:$0xff] }
 0x23a   :  { %v2755_v2 = vpack.c.b16 %v595_v47, %v594_v57 }
 0x23b   :  { %v464_v59 = vpop.f32.mrf.mxu0 }
 0x23c   :  { %662 = vrot.lane.b32.xlu0 %v2755_v2, %s2459_s23  ;;  %v614_v56 = vsel %vm600_vm15, %v2755_v2, 0  ;;  %v465_v60 = vadd.f32 %v2154_v44, %v464_v59 }
 0x23d   :  { %620 = vmatpush.bf16.xpose.msra.mxu2 %v614_v56 }
 0x23e   :  { %v565_v1 = vpack.c.bf16 %v465_v60, %v465_v60  ;;  %v973_v60 = vmul.f32 %v945_v29, %v2546_v13 }
 0x240   :  { %v577_v6 = vunpack.c.l.b16 %v565_v1 }
 0x243   :  { %v466_v62 = vpop.f32.mrf.mxu0 }
 0x244   :  { %v467_v3 = vadd.f32 %v2154_v44, %v466_v62  ;;  %724 = vrot.lane.b32.xlu0 %v2755_v2, %s2452_s27  ;;  %v2182_v44 = vpop.eup %2181 }
 0x245   :  { %621 = vmatpush.bf16.xpose.msra.mxu2 %v611_v48  ;;  %v2184_v56 = vpop.eup %2183  ;;  %v1013_v61 = vmul.f32 %v2182_v44, %v987_v49  ;;  %v2836_v48 = vadd.f32 1e-06, %v973_v60  ;;  %vm1019_vm1 = vweird.f32 %v2182_v44 }
 0x246   :  { %v566_v4 = vpack.c.bf16 %v467_v3, %v467_v3  ;;  %v1003_v1 = vmul.f32 %v2184_v56, %v986_v0  ;;  %v2117_v3 = vld [vmem:[#allocation10 + $0xb8] sm:$0xff]  ;;  %vm1009_vm3 = vweird.f32 %v2184_v56  ;;  %vm1020_vm4 = vmor %vm1018_vm0, %vm1019_vm1 }
 0x247   :  { %2185 = vrsqrt.f32 %v2836_v48  ;;  %vm1010_vm5 = vmor %vm1008_vm2, %vm1009_vm3  ;;  %vm1038_vm6 = vweird.f32 %v2836_v48 }
 0x248   :  { %v578_v7 = vunpack.c.l.b16 %v566_v4  ;;  %v1014_v4 = vmul.f32 %v2182_v44, %v1013_v61  ;;  %v2867_v61 = vld [vmem:[#allocation7 + $0x2] ss:$0 sm:$0xff] }
 0x24a   :  { %v2772_v8 = vpack.c.b16 %v578_v7, %v577_v6  ;;  %v668_v6 = vsel %vm600_vm15, %v657_v46, 0  ;;  %v1015_v16 = vmul.f32 0.5, %v1014_v4 }
 0x24c   :  { %654 = vrot.lane.b32.xlu2 %v2772_v8, %s2459_s23  ;;  %v1016_v41 = vsub.f32 1.5, %v1015_v16 }
 0x24d   :  { %622 = vmatpush.bf16.xpose.msra.mxu2 %v608_v10  ;;  %v2840_v10 = vadd.f32 1e-06, %v972_v25  ;;  %v2849_v27 = vpop.eup %2185  ;;  %v2111_v25 = vld [vmem:[#allocation10 + $0x88] sm:$0xff] }
 0x24e   :  { %vm1039_vm7 = vweird.f32 %v2849_v27 }
 0x24f   :  { %2187 = vrsqrt.f32 %v2840_v10  ;;  %vm1028_vm8 = vweird.f32 %v2840_v10  ;;  %vm1040_vm10 = vmor %vm1038_vm6, %vm1039_vm7 }
 0x250   :  { %952 = vadd.xlane.f32.xlu1 %v929_v11  ;;  %v1004_v11 = vmul.f32 %v2184_v56, %v1003_v1 }
 0x252   :  { %v1005_v19 = vmul.f32 0.5, %v1004_v11 }
 0x254   :  { %658 = vrot.lane.b32.xlu2 %v2739_v24, %s2459_s23  ;;  %v1006_v29 = vsub.f32 1.5, %v1005_v19 }
 0x255   :  { %623 = vmatpush.bf16.xpose.msra.mxu2 %v605_v45  ;;  %v723_v33 = vpop.permute.xlu0 %722  ;;  %v661_v35 = vpop.permute.xlu1 %660  ;;  %v2116_v45 = vld [vmem:[#allocation10 + $0xb0] sm:$0xff] }
 0x256   :  { %v674_v53 = vsel %vm600_vm15, %v661_v35, 0  ;;  %v736_v59 = vsel %vm600_vm15, %v723_v33, 0  ;;  %v2114_v33 = vld [vmem:[#allocation10 + $0xa0] sm:$0xff]  ;;  %v2188_v34 = vpop.eup %2187  ;;  %v1017_v35 = vmul.f32 %v2182_v44, %v1016_v41  ;;  %v1007_v43 = vmul.f32 %v2184_v56, %v1006_v29 }
 0x257   :  { %vm1029_vm9 = vweird.f32 %v2188_v34 }
 0x258   :  { %876 = vadd.xlane.f32.xlu1 %v2784_v15  ;;  %v1011_v0 = vsel %vm1010_vm5, %v2184_v56, %v1007_v43  ;;  %vm1030_vm11 = vmor %vm1028_vm8, %vm1029_vm9  ;;  %vm630_vm9 = vcmask 523264  }
 0x25c   :  { %1978 = vmatmul.msk.bf16.vlgmr.msra.gmra.mxu2 %vm600_vm15, %v2772_v8 }
 0x260   :  { %880 = vadd.xlane.f32.xlu1 %v2789_v14 }
 0x268   :  { %882 = vadd.xlane.f32.xlu1 %v2806_v63 }
 0x26e   :  { %950 = vadd.xlane.f32.xlu0 %v928_v21 }
 0x270   :  { %884 = vadd.xlane.f32.xlu1 %v2811_v12 }
 0x27d   :  { %948 = vadd.xlane.f32.xlu2 %v927_v26 }
 0x280   :  { %v2821_v38 = vpop.xlane.xlu1 %946 }
 0x281   :  { %v974_v60 = vmul.f32 %v2821_v38, %v2546_v13 }
 0x282   :  { %716 = vrot.lane.b32.xlu0 %v2772_v8, %s2452_s27 }
 0x295   :  { %718 = vrot.lane.b32.xlu2 %v2735_v22, %s2452_s27 }
 0x298   :  { %v721_v17 = vpop.permute.xlu1 %720 }
 0x299   :  { %v733_v7 = vsel %vm600_vm15, %v721_v17, 0 }
 0x2a6   :  { %v655_v42 = vpop.permute.xlu2 %654 }
 0x2ac   :  { %878 = vadd.xlane.f32.xlu0 %v2814_v32 }
 0x2ae   :  { %v663_v36 = vpop.permute.xlu0 %662  ;;  %v659_v57 = vpop.permute.xlu2 %658 }
 0x2af   :  { %v677_v37 = vsel %vm600_vm15, %v663_v36, 0  ;;  %v671_v47 = vsel %vm600_vm15, %v659_v57, 0  ;;  %v2112_v57 = vld [vmem:[#allocation10 + $0x90] sm:$0xff] }
 0x2b0   :  { %683 = vmatpush.bf16.xpose.msra.mxu3 %v677_v37 }
 0x2b4   :  { %888 = vadd.xlane.f32.xlu0 %v2818_v39 }
 0x2b6   :  { %v725_v50 = vpop.permute.xlu0 %724 }
 0x2b7   :  { %v739_v54 = vsel %vm600_vm15, %v725_v50, 0  ;;  %v1021_v50 = vsel %vm1020_vm4, %v2182_v44, %v1017_v35 }
 0x2b8   :  { %684 = vmatpush.bf16.xpose.msra.mxu3 %v674_v53  ;;  %745 = vmatpush.bf16.xpose.msrb.mxu0 %v739_v54 }
 0x2be   :  { %874 = vadd.xlane.f32.xlu2 %v2827_v55 }
 0x2c0   :  { %685 = vmatpush.bf16.xpose.msra.mxu3 %v671_v47  ;;  %746 = vmatpush.bf16.xpose.msrb.mxu0 %v736_v59  ;;  %v1163_v47 = vmul.f32 %v1021_v50, %v2709_v30 }
 0x2c2   :  { %v1180_v1 = vmul.f32 %v2867_v61, %v1163_v47 }
 0x2c3   :  { %v2833_v62 = vpop.xlane.xlu1 %952 }
 0x2c4   :  { %v977_v41 = vmul.f32 %v2833_v62, %v2546_v13 }
 0x2c8   :  { %686 = vmatpush.bf16.xpose.msra.mxu3 %v668_v6  ;;  %747 = vmatpush.bf16.xpose.msrb.mxu0 %v733_v7  ;;  %v2871_v6 = vld [vmem:[#allocation8 + $0x2] ss:$0 sm:$0xff] }
 0x2c9   :  { %v1197_v38 = vadd.f32 %v2871_v6, %v1180_v1 }
 0x2cb   :  { %v877_v18 = vpop.xlane.xlu1 %876 }
 0x2cc   :  { %v899_v21 = vmul.f32 %v877_v18, %v2546_v13 }
 0x2ce   :  { %v2846_v26 = vsub.f32 %v2784_v15, %v899_v21  ;;  %v1033_v15 = vmul.f32 %v2849_v27, %v2836_v48 }
 0x2cf   :  { %1979 = vmatmul.msk.bf16.vlgmr.msra.gmra.mxu3 %vm600_vm15, %v655_v42  ;;  %v1023_v42 = vmul.f32 %v2188_v34, %v2840_v10 }
 0x2d0   :  { %1287 = vmatpush.bf16.msrb.mxu3 %v2117_v3  ;;  %v931_v46 = vmul.f32 %v2846_v26, %v2846_v26  ;;  %v1034_v53 = vmul.f32 %v2849_v27, %v1033_v15  ;;  %v990_v3 = vadd.f32 1e-06, %v974_v60  ;;  %v993_v15 = vadd.f32 1e-06, %v977_v41 }
 0x2d1   :  { %v1024_v17 = vmul.f32 %v2188_v34, %v1023_v42 }
 0x2d2   :  { %956 = vadd.xlane.f32.xlu2 %v931_v46  ;;  %v1035_v59 = vmul.f32 0.5, %v1034_v53  ;;  %2189 = vrsqrt.f32 %v990_v3  ;;  %vm1048_vm12 = vweird.f32 %v990_v3  ;;  %vm1078_vm3 = vweird.f32 %v993_v15 }
 0x2d3   :  { %v881_v36 = vpop.xlane.xlu1 %880  ;;  %v1025_v44 = vmul.f32 0.5, %v1024_v17 }
 0x2d4   :  { %1288 = vmatpush.bf16.msrb.mxu3 %v2116_v45  ;;  %v901_v37 = vmul.f32 %v881_v36, %v2546_v13  ;;  %v1036_v56 = vsub.f32 1.5, %v1035_v59 }
 0x2d5   :  { %v1026_v30 = vsub.f32 1.5, %v1025_v44 }
 0x2d6   :  { %v2858_v49 = vsub.f32 %v2789_v14, %v901_v37  ;;  %v1162_v14 = vmul.f32 %v1011_v0, %v2695_v9  ;;  %v2110_v9 = vld [vmem:[#allocation10 + $0x80] sm:$0xff]  ;;  %v1037_v7 = vmul.f32 %v2849_v27, %v1036_v56 }
 0x2d7   :  { %v1027_v45 = vmul.f32 %v2188_v34, %v1026_v30 }
 0x2d8   :  { %1289 = vmatpush.bf16.msrb.mxu3 %v2115_v23  ;;  %v933_v54 = vmul.f32 %v2858_v49, %v2858_v49  ;;  %v1179_v4 = vmul.f32 %v2867_v61, %v1162_v14  ;;  %v1041_v18 = vsel %vm1040_vm10, %v2849_v27, %v1037_v7  ;;  %v2190_v21 = vpop.eup %2189 }
 0x2d9   :  { %v1031_v23 = vsel %vm1030_vm11, %v2188_v34, %v1027_v45  ;;  %v1165_v10 = vmul.f32 %v1041_v18, %v2726_v58  ;;  %v1043_v46 = vmul.f32 %v2190_v21, %v990_v3  ;;  %vm1049_vm13 = vweird.f32 %v2190_v21 }
 0x2da   :  { %960 = vadd.xlane.f32.xlu2 %v933_v54  ;;  %v1196_v11 = vadd.f32 %v2871_v6, %v1179_v4  ;;  %v1164_v29 = vmul.f32 %v1031_v23, %v2719_v51  ;;  %vm1050_vm14 = vmor %vm1048_vm12, %vm1049_vm13 }
 0x2db   :  { %v1182_v35 = vmul.f32 %v2867_v61, %v1165_v10  ;;  %v1044_v36 = vmul.f32 %v2190_v21, %v1043_v46 }
 0x2dc   :  { %1290 = vmatpush.bf16.msrb.mxu3 %v2114_v33  ;;  %v1212_v48 = vpack.c.bf16 %v1197_v38, %v1196_v11  ;;  %v1181_v27 = vmul.f32 %v2867_v61, %v1164_v29 }
 0x2dd   :  { %v1199_v58 = vadd.f32 %v2871_v6, %v1182_v35  ;;  %v1045_v51 = vmul.f32 0.5, %v1044_v36 }
 0x2de   :  { %v1198_v34 = vadd.f32 %v2871_v6, %v1181_v27 }
 0x2df   :  { %v1046_v50 = vsub.f32 1.5, %v1045_v51 }
 0x2e0   :  { %1291 = vmatpush.bf16.msrb.mxu3 %v2113_v52  ;;  %v1213_v42 = vpack.c.bf16 %v1199_v58, %v1198_v34 }
 0x2e1   :  { %v951_v16 = vpop.xlane.xlu0 %950 }
 0x2e2   :  { %v976_v19 = vmul.f32 %v951_v16, %v2546_v13 }
 0x2e4   :  { %1292 = vmatpush.bf16.msrb.mxu3 %v2112_v57  ;;  %v992_v33 = vadd.f32 1e-06, %v976_v19  ;;  %v1047_v57 = vmul.f32 %v2190_v21, %v1046_v50 }
 0x2e6   :  { %2191 = vrsqrt.f32 %v992_v33  ;;  %v1051_v56 = vsel %vm1050_vm14, %v2190_v21, %v1047_v57  ;;  %vm1068_vm7 = vweird.f32 %v992_v33 }
 0x2e7   :  { %2193 = vrsqrt.f32 %v993_v15  ;;  %v1166_v3 = vmul.f32 %v1051_v56, %v2749_v31 }
 0x2e8   :  { %1293 = vmatpush.bf16.msrb.mxu3 %v2111_v25 }
 0x2e9   :  { %v1183_v16 = vmul.f32 %v2867_v61, %v1166_v3 }
 0x2eb   :  { %v1200_v19 = vadd.f32 %v2871_v6, %v1183_v16 }
 0x2ec   :  { %1294 = vmatpush.bf16.msrb.mxu3 %v2110_v9  ;;  %v2192_v52 = vpop.eup %2191 }
 0x2ed   :  { %v2194_v54 = vpop.eup %2193  ;;  %v1063_v17 = vmul.f32 %v2192_v52, %v992_v33  ;;  %vm1069_vm5 = vweird.f32 %v2192_v52 }
 0x2ee   :  { %v1073_v47 = vmul.f32 %v2194_v54, %v993_v15  ;;  %vm1079_vm4 = vweird.f32 %v2194_v54  ;;  %vm1070_vm8 = vmor %vm1068_vm7, %vm1069_vm5 }
 0x2ef   :  { %1295 = vmatmul.bf16.vlgmr.msrb.gmra.mxu3 %v1212_v48  ;;  %v1064_v60 = vmul.f32 %v2192_v52, %v1063_v17  ;;  %vm1080_vm6 = vmor %vm1078_vm3, %vm1079_vm4 }
 0x2f0   :  { %v949_v37 = vpop.xlane.xlu2 %948  ;;  %v1074_v44 = vmul.f32 %v2194_v54, %v1073_v47  ;;  %v2936_v47 = vld [vmem:[#allocation13 + $0x70] sm:$0xff] }
 0x2f1   :  { %v975_v43 = vmul.f32 %v949_v37, %v2546_v13  ;;  %v1065_v4 = vmul.f32 0.5, %v1064_v60 }
 0x2f2   :  { %780 = vrot.lane.b32.xlu2 %v2735_v22, %s2460_s25  ;;  %v1075_v9 = vmul.f32 0.5, %v1074_v44 }
 0x2f3   :  { %v991_v62 = vadd.f32 1e-06, %v975_v43  ;;  %v1066_v7 = vsub.f32 1.5, %v1065_v4  ;;  %v883_v43 = vpop.xlane.xlu1 %882  ;;  %v2962_v4 = vld [vmem:[%s3251_s5 + $0x2] ss:$0 sm:$0xff] }
 0x2f4   :  { %v717_v1 = vpop.permute.xlu0 %716  ;;  %v1076_v48 = vsub.f32 1.5, %v1075_v9 }
 0x2f5   :  { %2195 = vrsqrt.f32 %v991_v62  ;;  %vm1058_vm1 = vweird.f32 %v991_v62  ;;  %v1067_v21 = vmul.f32 %v2192_v52, %v1066_v7 }
 0x2f6   :  { %v1077_v23 = vmul.f32 %v2194_v54, %v1076_v48 }
 0x2f7   :  { %v1071_v41 = vsel %vm1070_vm8, %v2192_v52, %v1067_v21 }
 0x2f8   :  { %v719_v53 = vpop.permute.xlu2 %718  ;;  %v1168_v46 = vmul.f32 %v1071_v41, %v2794_v20  ;;  %v902_v20 = vmul.f32 %v883_v43, %v2546_v13 }
 0x2f9   :  { %v730_v0 = vsel %vm600_vm15, %v719_v53, 0 }
 0x2fa   :  { %748 = vmatpush.bf16.xpose.msrb.mxu0 %v730_v0  ;;  %v1185_v35 = vmul.f32 %v2867_v61, %v1168_v46  ;;  %v2914_v51 = vsub.f32 %v2806_v63, %v902_v20 }
 0x2fb   :  { %v2196_v22 = vpop.eup %2195 }
 0x2fc   :  { %v1053_v59 = vmul.f32 %v2196_v22, %v991_v62  ;;  %vm1059_vm0 = vweird.f32 %v2196_v22  ;;  %v1202_v36 = vadd.f32 %v2871_v6, %v1185_v35 }
 0x2fd   :  { %vm1060_vm2 = vmor %vm1058_vm1, %vm1059_vm0 }
 0x2fe   :  { %v1054_v14 = vmul.f32 %v2196_v22, %v1053_v59 }
 0x2ff   :  { %1300 = vmatmul.bf16.gmra.mxu3 %v1213_v42  ;;  %v885_v42 = vpop.xlane.xlu1 %884 }
 0x300   :  { %v1055_v25 = vmul.f32 0.5, %v1054_v14  ;;  %v903_v53 = vmul.f32 %v885_v42, %v2546_v13 }
 0x301   :  { %1980 = vmatmul.msk.bf16.vlgmr.msrb.gmra.mxu0 %vm600_vm15, %v717_v1 }
 0x302   :  { %v1056_v30 = vsub.f32 1.5, %v1055_v25  ;;  %v2926_v63 = vsub.f32 %v2811_v12, %v903_v53 }
 0x304   :  { %v1057_v38 = vmul.f32 %v2196_v22, %v1056_v30 }
 0x306   :  { %v1061_v11 = vsel %vm1060_vm2, %v2196_v22, %v1057_v38 }
 0x307   :  { %v1167_v45 = vmul.f32 %v1061_v11, %v2800_v40  ;;  %v1081_v40 = vsel %vm1080_vm6, %v2194_v54, %v1077_v23 }
 0x308   :  { %v1169_v29 = vmul.f32 %v1081_v40, %v2770_v5 }
 0x309   :  { %v1184_v18 = vmul.f32 %v2867_v61, %v1167_v45 }
 0x30a   :  { %v1186_v15 = vmul.f32 %v2867_v61, %v1169_v29 }
 0x30b   :  { %v1201_v31 = vadd.f32 %v2871_v6, %v1184_v18 }
 0x30c   :  { %v1203_v37 = vadd.f32 %v2871_v6, %v1186_v15 }
 0x30d   :  { %v1214_v10 = vpack.c.bf16 %v1201_v31, %v1200_v19 }
 0x30e   :  { %v1215_v27 = vpack.c.bf16 %v1203_v37, %v1202_v36 }
 0x30f   :  { %1305 = vmatmul.bf16.gmra.mxu3 %v1214_v10 }
 0x31f   :  { %v879_v33 = vpop.xlane.xlu0 %878  ;;  %1310 = vmatmul.bf16.gmra.mxu3 %v1215_v27 }
 0x320   :  { %v900_v58 = vmul.f32 %v879_v33, %v2546_v13 }
 0x322   :  { %v2908_v62 = vsub.f32 %v2814_v32, %v900_v58  ;;  %v934_v32 = vmul.f32 %v2914_v51, %v2914_v51 }
 0x324   :  { %v932_v5 = vmul.f32 %v2908_v62, %v2908_v62 }
 0x326   :  { %958 = vadd.xlane.f32.xlu0 %v932_v5 }
 0x327   :  { %v889_v34 = vpop.xlane.xlu0 %888 }
 0x328   :  { %v905_v52 = vmul.f32 %v889_v34, %v2546_v13 }
 0x32a   :  { %v2918_v50 = vsub.f32 %v2818_v39, %v905_v52  ;;  %v935_v39 = vmul.f32 %v2926_v63, %v2926_v63 }
 0x32c   :  { %v937_v54 = vmul.f32 %v2918_v50, %v2918_v50 }
 0x32e   :  { %962 = vadd.xlane.f32.xlu0 %v934_v32  ;;  %968 = vadd.xlane.f32.xlu2 %v937_v54 }
 0x331   :  { %v875_v0 = vpop.xlane.xlu2 %874 }
 0x332   :  { %v898_v17 = vmul.f32 %v875_v0, %v2546_v13 }
 0x334   :  { %v2932_v22 = vsub.f32 %v2827_v55, %v898_v17 }
 0x336   :  { %964 = vadd.xlane.f32.xlu0 %v935_v39  ;;  %v930_v57 = vmul.f32 %v2932_v22, %v2932_v22 }
 0x338   :  { %954 = vadd.xlane.f32.xlu1 %v930_v57 }
 0x340   :  { %886 = vadd.xlane.f32.xlu1 %v2936_v47 }
 0x345   :  { %v957_v44 = vpop.xlane.xlu2 %956 }
 0x346   :  { %786 = vrot.lane.b32.xlu2 %v2755_v2, %s2460_s25  ;;  %v979_v30 = vmul.f32 %v957_v44, %v2546_v13 }
 0x348   :  { %v2968_v7 = vadd.f32 1e-06, %v979_v30 }
 0x34a   :  { %782 = vrot.lane.b32.xlu0 %v2739_v24, %s2460_s25  ;;  %2197 = vrsqrt.f32 %v2968_v7  ;;  %vm1098_vm10 = vweird.f32 %v2968_v7 }
 0x34d   :  { %v961_v1 = vpop.xlane.xlu2 %960 }
 0x34e   :  { %v981_v36 = vmul.f32 %v961_v1, %v2546_v13 }
 0x350   :  { %v2980_v29 = vpop.eup %2197  ;;  %v2991_v34 = vadd.f32 1e-06, %v981_v36 }
 0x351   :  { %v1093_v43 = vmul.f32 %v2980_v29, %v2968_v7  ;;  %vm1099_vm11 = vweird.f32 %v2980_v29 }
 0x352   :  { %778 = vrot.lane.b32.xlu0 %v2772_v8, %s2460_s25  ;;  %v2947_v12 = vpop.f32.mrf.mxu3  ;;  %vm3028_vm12 = vmor %vm1098_vm10, %vm1099_vm11  ;;  %vm1118_vm3 = vweird.f32 %v2991_v34 }
 0x353   :  { %v693_v60 = vsel %vm630_vm9, %v2947_v12, -inf  ;;  %v1094_v0 = vmul.f32 %v2980_v29, %v1093_v43 }
 0x355   :  { %v2966_v9 = vpop.permute.xlu2 %780 }
 0x359   :  { %784 = vrot.lane.b32.xlu1 %v2741_v28, %s2460_s25 }
 0x35a   :  { %v2949_v55 = vpop.f32.mrf.mxu3 }
 0x36f   :  { %694 = vmax.xlane.f32.xlu2 %v693_v60 }
 0x372   :  { %v1296_v59 = vpop.f32.mrf.mxu3 }
 0x373   :  { %v1297_v21 = vadd.f32 %v2962_v4, %v1296_v59 }
 0x375   :  { %v1336_v46 = vpack.c.bf16 %v1297_v21, %v1297_v21 }
 0x377   :  { %v1361_v37 = vunpack.c.l.b16 %v1336_v46 }
 0x37a   :  { %v1298_v2 = vpop.f32.mrf.mxu3 }
 0x37b   :  { %v1299_v16 = vadd.f32 %v2962_v4, %v1298_v2 }
 0x37d   :  { %v1337_v23 = vpack.c.bf16 %v1299_v16, %v1299_v16 }
 0x37e   :  { %v2953_v14 = vpop.f32.mrf.mxu0 }
 0x37f   :  { %v1362_v35 = vunpack.c.l.b16 %v1337_v23 }
 0x381   :  { %v2987_v58 = vpack.c.b16 %v1362_v35, %v1361_v37 }
 0x382   :  { %v1301_v24 = vpop.f32.mrf.mxu3 }
 0x383   :  { %v1302_v59 = vadd.f32 %v2962_v4, %v1301_v24 }
 0x386   :  { %v2955_v25 = vpop.f32.mrf.mxu0 }
 0x387   :  { %v758_v28 = vsel %vm630_vm9, %v2955_v25, -inf }
 0x388   :  { %759 = vmax.xlane.f32.xlu0 %v758_v28  ;;  %v1095_v28 = vmul.f32 0.5, %v1094_v0 }
 0x38a   :  { %v1303_v8 = vpop.f32.mrf.mxu3  ;;  %v1096_v24 = vsub.f32 1.5, %v1095_v28 }
 0x38b   :  { %v1304_v39 = vadd.f32 %v2962_v4, %v1303_v8 }
 0x38d   :  { %v1339_v1 = vpack.c.bf16 %v1304_v39, %v1304_v39 }
 0x38f   :  { %v1364_v16 = vunpack.c.l.b16 %v1339_v1 }
 0x392   :  { %v1306_v56 = vpop.f32.mrf.mxu3 }
 0x393   :  { %v1307_v3 = vadd.f32 %v2962_v4, %v1306_v56 }
 0x395   :  { %v1340_v11 = vpack.c.bf16 %v1307_v3, %v1307_v3 }
 0x397   :  { %v1365_v19 = vunpack.c.l.b16 %v1340_v11 }
 0x399   :  { %v959_v18 = vpop.xlane.xlu0 %958 }
 0x39a   :  { %v1308_v38 = vpop.f32.mrf.mxu3  ;;  %v980_v15 = vmul.f32 %v959_v18, %v2546_v13 }
 0x39b   :  { %v1309_v45 = vadd.f32 %v2962_v4, %v1308_v38  ;;  %v1338_v38 = vpack.c.bf16 %v1302_v59, %v1302_v59 }
 0x39c   :  { %v2989_v20 = vadd.f32 1e-06, %v980_v15 }
 0x39d   :  { %v1341_v48 = vpack.c.bf16 %v1309_v45, %v1309_v45 }
 0x39e   :  { %2199 = vrsqrt.f32 %v2989_v20  ;;  %vm1108_vm1 = vweird.f32 %v2989_v20 }
 0x39f   :  { %v1366_v31 = vunpack.c.l.b16 %v1341_v48  ;;  %2201 = vrsqrt.f32 %v2991_v34 }
 0x3a1   :  { %v2974_v10 = vpack.c.b16 %v1366_v31, %v1365_v19  ;;  %v2976_v41 = vpop.xlane.xlu2 %968  ;;  %v963_v33 = vpop.xlane.xlu0 %962  ;;  %v1363_v31 = vunpack.c.l.b16 %v1338_v38 }
 0x3a2   :  { %v1311_v40 = vpop.f32.mrf.mxu3  ;;  %v982_v23 = vmul.f32 %v963_v33, %v2546_v13 }
 0x3a3   :  { %1403 = vrot.lane.b32.xlu2 %v2974_v10, %s2459_s23  ;;  %v1312_v27 = vadd.f32 %v2962_v4, %v1311_v40  ;;  %v1097_v40 = vmul.f32 %v2980_v29, %v1096_v24 }
 0x3a4   :  { %v3005_v3 = vpop.eup %2199  ;;  %v3037_v43 = vadd.f32 1e-06, %v982_v23 }
 0x3a5   :  { %v1342_v32 = vpack.c.bf16 %v1312_v27, %v1312_v27  ;;  %v3010_v11 = vpop.eup %2201  ;;  %v1103_v18 = vmul.f32 %v3005_v3, %v2989_v20  ;;  %vm1109_vm2 = vweird.f32 %v3005_v3 }
 0x3a6   :  { %v1113_v46 = vmul.f32 %v3010_v11, %v2991_v34  ;;  %vm1119_vm4 = vweird.f32 %v3010_v11  ;;  %vm3059_vm5 = vmor %vm1108_vm1, %vm1109_vm2  ;;  %v696_v34 = vsel %vm630_vm9, %v2949_v55, -inf  ;;  %vm1128_vm10 = vweird.f32 %v3037_v43 }
 0x3a7   :  { %v1367_v60 = vunpack.c.l.b16 %v1342_v32  ;;  %v1104_v37 = vmul.f32 %v3005_v3, %v1103_v18  ;;  %vm1120_vm6 = vmor %vm1118_vm3, %vm1119_vm4 }
 0x3a8   :  { %v1114_v33 = vmul.f32 %v3010_v11, %v1113_v46 }
 0x3a9   :  { %v787_v5 = vpop.permute.xlu2 %786  ;;  %v965_v30 = vpop.xlane.xlu0 %964 }
 0x3aa   :  { %v1313_v42 = vpop.f32.mrf.mxu3  ;;  %v801_v52 = vsel %vm600_vm15, %v787_v5, 0  ;;  %v983_v48 = vmul.f32 %v965_v30, %v2546_v13 }
 0x3ab   :  { %v1314_v53 = vadd.f32 %v2962_v4, %v1313_v42  ;;  %1399 = vrot.lane.b32.xlu2 %v2987_v58, %s2459_s23  ;;  %v955_v54 = vpop.xlane.xlu1 %954  ;;  %807 = vmatpush.bf16.xpose.msrb.mxu2 %v801_v52  ;;  %v1101_v42 = vsel %vm3028_vm12, %v2980_v29, %v1097_v40  ;;  %v1105_v52 = vmul.f32 0.5, %v1104_v37 }
 0x3ac   :  { %v978_v17 = vmul.f32 %v955_v54, %v2546_v13  ;;  %v3034_v36 = vadd.f32 1e-06, %v983_v48  ;;  %v1115_v54 = vmul.f32 0.5, %v1114_v33 }
 0x3ad   :  { %v1343_v57 = vpack.c.bf16 %v1314_v53, %v1314_v53  ;;  %v1171_v53 = vmul.f32 %v1101_v42, %v2846_v26  ;;  %v1106_v39 = vsub.f32 1.5, %v1105_v52 }
 0x3ae   :  { %v994_v44 = vadd.f32 1e-06, %v978_v17  ;;  %v755_v17 = vsel %vm630_vm9, %v2953_v14, -inf  ;;  %vm1138_vm7 = vweird.f32 %v3034_v36 }
 0x3af   :  { %v1368_v2 = vunpack.c.l.b16 %v1343_v57  ;;  %v1107_v28 = vmul.f32 %v3005_v3, %v1106_v39 }
 0x3b0   :  { %2203 = vrsqrt.f32 %v994_v44  ;;  %vm1088_vm14 = vweird.f32 %v994_v44 }
 0x3b1   :  { %v3003_v56 = vpack.c.b16 %v1368_v2, %v1367_v60  ;;  %2205 = vrsqrt.f32 %v3034_v36  ;;  %v1188_v60 = vmul.f32 %v2867_v61, %v1171_v53  ;;  %v1116_v2 = vsub.f32 1.5, %v1115_v54 }
 0x3b2   :  { %2207 = vrsqrt.f32 %v3037_v43 }
 0x3b3   :  { %1384 = vmatpush.bf16.msra.mxu0 %v3003_v56  ;;  %1405 = vrot.lane.b32.xlu0 %v3003_v56, %s2459_s23  ;;  %v887_v8 = vpop.xlane.xlu1 %886  ;;  %v1205_v20 = vadd.f32 %v2871_v6, %v1188_v60  ;;  %v1117_v38 = vmul.f32 %v3010_v11, %v1116_v2 }
 0x3b4   :  { %v904_v45 = vmul.f32 %v887_v8, %v2546_v13 }
 0x3b6   :  { %v3019_v21 = vsub.f32 %v2936_v47, %v904_v45  ;;  %v2204_v19 = vpop.eup %2203  ;;  %v3032_v47 = vpack.c.b16 %v1364_v16, %v1363_v31  ;;  %v1111_v16 = vsel %vm3059_vm5, %v3005_v3, %v1107_v28  ;;  %v1121_v31 = vsel %vm1120_vm6, %v3010_v11, %v1117_v38 }
 0x3b7   :  { %1385 = vmatpush.bf16.msra.mxu0 %v2974_v10  ;;  %v1083_v7 = vmul.f32 %v2204_v19, %v994_v44  ;;  %vm1089_vm13 = vweird.f32 %v2204_v19  ;;  %v2206_v57 = vpop.eup %2205  ;;  %v1172_v23 = vmul.f32 %v1111_v16, %v2908_v62  ;;  %v1173_v46 = vmul.f32 %v1121_v31, %v2858_v49 }
 0x3b8   :  { %v936_v35 = vmul.f32 %v3019_v21, %v3019_v21  ;;  %vm1090_vm0 = vmor %vm1088_vm14, %vm1089_vm13  ;;  %v2208_v26 = vpop.eup %2207  ;;  %v1133_v1 = vmul.f32 %v2206_v57, %v3034_v36  ;;  %vm1139_vm8 = vweird.f32 %v2206_v57  ;;  %v792_v36 = vsel %vm600_vm15, %v2966_v9, 0 }
 0x3b9   :  { %v1084_v27 = vmul.f32 %v2204_v19, %v1083_v7  ;;  %v1123_v8 = vmul.f32 %v2208_v26, %v3037_v43  ;;  %v1189_v15 = vmul.f32 %v2867_v61, %v1172_v23  ;;  %v1190_v3 = vmul.f32 %v2867_v61, %v1173_v46  ;;  %vm1140_vm12 = vmor %vm1138_vm7, %vm1139_vm8 }
 0x3ba   :  { %966 = vadd.xlane.f32.xlu1 %v936_v35  ;;  %v1134_v45 = vmul.f32 %v2206_v57, %v1133_v1  ;;  %vm1129_vm11 = vweird.f32 %v2208_v26 }
 0x3bb   :  { %1386 = vmatpush.bf16.msra.mxu0 %v3032_v47  ;;  %v1085_v5 = vmul.f32 0.5, %v1084_v27  ;;  %v1124_v18 = vmul.f32 %v2208_v26, %v1123_v8  ;;  %v1206_v11 = vadd.f32 %v2871_v6, %v1189_v15  ;;  %v1207_v62 = vadd.f32 %v2871_v6, %v1190_v3  ;;  %vm1130_vm13 = vmor %vm1128_vm10, %vm1129_vm11  ;;  %v3115_v3 = vpop.f32.mrf.mxu2 }
 0x3bc   :  { %v1135_v40 = vmul.f32 0.5, %v1134_v45  ;;  %v783_v35 = vpop.permute.xlu0 %782 }
 0x3bd   :  { %v1086_v32 = vsub.f32 1.5, %v1085_v5  ;;  %v1125_v7 = vmul.f32 0.5, %v1124_v18  ;;  %v795_v33 = vsel %vm600_vm15, %v783_v35, 0  ;;  %v1217_v42 = vpack.c.bf16 %v1207_v62, %v1206_v11 }
 0x3be   :  { %v1136_v37 = vsub.f32 1.5, %v1135_v40  ;;  %v631_v11 = vsel %vm630_vm9, %v3115_v3, -inf }
 0x3bf   :  { %1387 = vmatpush.bf16.msra.mxu0 %v2987_v58  ;;  %v1087_v0 = vmul.f32 %v2204_v19, %v1086_v32  ;;  %v1126_v27 = vsub.f32 1.5, %v1125_v7 }
 0x3c0   :  { %v1137_v49 = vmul.f32 %v2206_v57, %v1136_v37 }
 0x3c1   :  { %v1091_v29 = vsel %vm1090_vm0, %v2204_v19, %v1087_v0  ;;  %v1127_v5 = vmul.f32 %v2208_v26, %v1126_v27 }
 0x3c2   :  { %756 = vmax.xlane.f32.xlu1 %v755_v17  ;;  %v1170_v59 = vmul.f32 %v1091_v29, %v2932_v22  ;;  %v1141_v52 = vsel %vm1140_vm12, %v2206_v57, %v1137_v49 }
 0x3c3   :  { %v1131_v32 = vsel %vm1130_vm13, %v2208_v26, %v1127_v5  ;;  %v1175_v53 = vmul.f32 %v1141_v52, %v2926_v63 }
 0x3c4   :  { %v1187_v44 = vmul.f32 %v2867_v61, %v1170_v59  ;;  %v1174_v54 = vmul.f32 %v1131_v32, %v2914_v51  ;;  %v779_v17 = vpop.permute.xlu0 %778 }
 0x3c5   :  { %v1192_v43 = vmul.f32 %v2867_v61, %v1175_v53 }
 0x3c6   :  { %v1204_v30 = vadd.f32 %v2871_v6, %v1187_v44  ;;  %v1191_v29 = vmul.f32 %v2867_v61, %v1174_v54 }
 0x3c7   :  { %v1209_v59 = vadd.f32 %v2871_v6, %v1192_v43 }
 0x3c8   :  { %v1216_v24 = vpack.c.bf16 %v1205_v20, %v1204_v30  ;;  %v1208_v9 = vadd.f32 %v2871_v6, %v1191_v29 }
 0x3ca   :  { %697 = vmax.xlane.f32.xlu1 %v696_v34  ;;  %1315 = vmatmul.bf16.gmra.mxu3 %v1216_v24  ;;  %v1218_v60 = vpack.c.bf16 %v1209_v59, %v1208_v9 }
 0x3cb   :  { %v785_v48 = vpop.permute.xlu1 %784 }
 0x3cc   :  { %v798_v19 = vsel %vm600_vm15, %v785_v48, 0 }
 0x3cd   :  { %808 = vmatpush.bf16.xpose.msrb.mxu2 %v798_v19 }
 0x3d5   :  { %809 = vmatpush.bf16.xpose.msrb.mxu2 %v795_v33 }
 0x3da   :  { %1320 = vmatmul.bf16.gmra.mxu3 %v1217_v42 }
 0x3dd   :  { %810 = vmatpush.bf16.xpose.msrb.mxu2 %v792_v36 }
 0x3e2   :  { %v695_v0 = vpop.xlane.xlu2 %694 }
 0x3e3   :  { %v699_v39 = vsub.f32 %v2947_v12, %v695_v0 }
 0x3e4   :  { %1981 = vmatmul.msk.bf16.vlgmr.msrb.gmra.mxu2 %vm600_vm15, %v779_v17 }
 0x3e5   :  { %v701_v57 = vmul.f32 1.442695, %v699_v39 }
 0x3e7   :  { %2209 = vpow2.f32 %v701_v57 }
 0x3ea   :  { %1325 = vmatmul.bf16.gmra.mxu3 %v1218_v60 }
 0x3ed   :  { %v3093_v63 = vpop.eup %2209 }
 0x3ee   :  { %v705_v51 = vsel %vm630_vm9, %v3093_v63, 0.0 }
 0x3ef   :  { %706 = vadd.xlane.f32.xlu0 %v705_v51 }
 0x3fb   :  { %v760_v2 = vpop.xlane.xlu0 %759 }
 0x3fc   :  { %v762_v12 = vsub.f32 %v2955_v25, %v760_v2  ;;  %v985_v25 = vmul.f32 %v2976_v41, %v2546_v13 }
 0x3fd   :  { %v1404_v38 = vpop.permute.xlu2 %1403 }
 0x3fe   :  { %v765_v26 = vmul.f32 1.442695, %v762_v12  ;;  %v1001_v1 = vadd.f32 1e-06, %v985_v25 }
 0x400   :  { %2211 = vpow2.f32 %v765_v26  ;;  %vm1158_vm14 = vweird.f32 %v1001_v1 }
 0x401   :  { %2213 = vrsqrt.f32 %v1001_v1 }
 0x403   :  { %1498 = vrot.lane.b32.xlu0 %v3003_v56, %s2452_s27 }
 0x406   :  { %v3100_v44 = vpop.eup %2211 }
 0x407   :  { %v770_v28 = vsel %vm630_vm9, %v3100_v44, 0.0  ;;  %v2214_v30 = vpop.eup %2213 }
 0x408   :  { %771 = vadd.xlane.f32.xlu2 %v770_v28  ;;  %v1153_v20 = vmul.f32 %v2214_v30, %v1001_v1  ;;  %vm1159_vm0 = vweird.f32 %v2214_v30 }
 0x409   :  { %vm1160_vm1 = vmor %vm1158_vm14, %vm1159_vm0 }
 0x40a   :  { %v1154_v8 = vmul.f32 %v2214_v30, %v1153_v20 }
 0x40b   :  { %1496 = vrot.lane.b32.xlu0 %v2974_v10, %s2452_s27 }
 0x40c   :  { %v1155_v16 = vmul.f32 0.5, %v1154_v8 }
 0x40e   :  { %v1156_v48 = vsub.f32 1.5, %v1155_v16  ;;  %v627_v16 = vpop.f32.mrf.mxu2 }
 0x410   :  { %v1157_v19 = vmul.f32 %v2214_v30, %v1156_v48 }
 0x412   :  { %v1161_v7 = vsel %vm1160_vm1, %v2214_v30, %v1157_v19 }
 0x413   :  { %1494 = vrot.lane.b32.xlu0 %v3032_v47, %s2452_s27  ;;  %v1177_v37 = vmul.f32 %v1161_v7, %v2918_v50 }
 0x415   :  { %v1194_v62 = vmul.f32 %v2867_v61, %v1177_v37 }
 0x417   :  { %v1211_v42 = vadd.f32 %v2871_v6, %v1194_v62 }
 0x41b   :  { %1492 = vrot.lane.b32.xlu0 %v2987_v58, %s2452_s27 }
 0x425   :  { %v1406_v22 = vpop.permute.xlu0 %1405 }
 0x426   :  { %1418 = vmatpush.bf16.msra.mxu2 %v1406_v22 }
 0x42a   :  { %1419 = vmatpush.bf16.msra.mxu2 %v1404_v38 }
 0x42d   :  { %v967_v34 = vpop.xlane.xlu1 %966 }
 0x42e   :  { %v984_v24 = vmul.f32 %v967_v34, %v2546_v13 }
 0x430   :  { %v1000_v45 = vadd.f32 1e-06, %v984_v24 }
 0x432   :  { %2215 = vrsqrt.f32 %v1000_v45  ;;  %vm1148_vm3 = vweird.f32 %v1000_v45 }
 0x435   :  { %v757_v41 = vpop.xlane.xlu1 %756 }
 0x436   :  { %v761_v12 = vsub.f32 %v2953_v14, %v757_v41  ;;  %v634_v41 = vsel %vm630_vm9, %v627_v16, -inf }
 0x438   :  { %v2216_v18 = vpop.eup %2215  ;;  %v763_v30 = vmul.f32 1.442695, %v761_v12 }
 0x439   :  { %v1143_v31 = vmul.f32 %v2216_v18, %v1000_v45  ;;  %vm1149_vm2 = vweird.f32 %v2216_v18 }
 0x43a   :  { %vm1150_vm4 = vmor %vm1148_vm3, %vm1149_vm2 }
 0x43b   :  { %v1144_v23 = vmul.f32 %v2216_v18, %v1143_v31 }
 0x43d   :  { %v1145_v40 = vmul.f32 0.5, %v1144_v23  ;;  %v698_v46 = vpop.xlane.xlu1 %697 }
 0x43e   :  { %v700_v35 = vsub.f32 %v2949_v55, %v698_v46 }
 0x43f   :  { %v1146_v15 = vsub.f32 1.5, %v1145_v40 }
 0x440   :  { %v703_v13 = vmul.f32 1.442695, %v700_v35 }
 0x441   :  { %v1147_v27 = vmul.f32 %v2216_v18, %v1146_v15 }
 0x442   :  { %2217 = vpow2.f32 %v703_v13 }
 0x443   :  { %v1151_v33 = vsel %vm1150_vm4, %v2216_v18, %v1147_v27  ;;  %2219 = vpow2.f32 %v763_v30  ;;  %v2121_v30 = vld [vmem:[#allocation11 + $0x18] sm:$0xff] }
 0x444   :  { %v1176_v49 = vmul.f32 %v1151_v33, %v3019_v21  ;;  %1455 = vmatpush.bf16.msrb.mxu0 %v2121_v30  ;;  %v2131_v30 = vld [vmem:[#allocation11 + $0x28] sm:$0xff] }
 0x445   :  { %632 = vmax.xlane.f32.xlu0 %v631_v11 }
 0x446   :  { %v1193_v55 = vmul.f32 %v2867_v61, %v1176_v49  ;;  %v1400_v49 = vpop.permute.xlu2 %1399 }
 0x448   :  { %v3122_v5 = vpop.eup %2217  ;;  %v1210_v50 = vadd.f32 %v2871_v6, %v1193_v55 }
 0x449   :  { %v708_v52 = vsel %vm630_vm9, %v3122_v5, 0.0  ;;  %v2220_v14 = vpop.eup %2219 }
 0x44a   :  { %709 = vadd.xlane.f32.xlu1 %v708_v52  ;;  %v1219_v36 = vpack.c.bf16 %v1211_v42, %v1210_v50  ;;  %v767_v45 = vsel %vm630_vm9, %v2220_v14, 0.0 }
 0x44c   :  { %1330 = vmatmul.bf16.gmra.mxu3 %v1219_v36 }
 0x44d   :  { %v1316_v32 = vpop.f32.mrf.mxu3 }
 0x44e   :  { %v1317_v26 = vadd.f32 %v2962_v4, %v1316_v32 }
 0x450   :  { %v1344_v20 = vpack.c.bf16 %v1317_v26, %v1317_v26 }
 0x452   :  { %v1639_v8 = vunpack.c.l.b16 %v1344_v20  ;;  %v2120_v20 = vld [vmem:[#allocation11 + $0x10] sm:$0xff] }
 0x453   :  { %1456 = vmatpush.bf16.msrb.mxu0 %v2120_v20 }
 0x455   :  { %v1318_v53 = vpop.f32.mrf.mxu3 }
 0x456   :  { %v1319_v51 = vadd.f32 %v2962_v4, %v1318_v53 }
 0x458   :  { %v1345_v1 = vpack.c.bf16 %v1319_v51, %v1319_v51 }
 0x459   :  { %1558 = vrot.lane.b32.xlu0 %v2987_v58, %s2460_s25 }
 0x45a   :  { %v1640_v38 = vunpack.c.l.b16 %v1345_v1 }
 0x45c   :  { %v3147_v34 = vpack.c.b16 %v1640_v38, %v1639_v8 }
 0x45d   :  { %v1321_v21 = vpop.f32.mrf.mxu3 }
 0x45e   :  { %v1322_v61 = vadd.f32 %v2962_v4, %v1321_v21 }
 0x460   :  { %v1346_v43 = vpack.c.bf16 %v1322_v61, %v1322_v61 }
 0x462   :  { %v1641_v17 = vunpack.c.l.b16 %v1346_v43  ;;  %v707_v24 = vpop.xlane.xlu0 %706 }
 0x463   :  { %1401 = vrot.lane.b32.xlu1 %v3032_v47, %s2459_s23 }
 0x465   :  { %v1323_v54 = vpop.f32.mrf.mxu3 }
 0x466   :  { %v1324_v6 = vadd.f32 %v2962_v4, %v1323_v54 }
 0x467   :  { %v3160_v15 = vpop.f32.mrf.mxu2 }
 0x468   :  { %v1347_v0 = vpack.c.bf16 %v1324_v6, %v1324_v6  ;;  %v817_v37 = vsel %vm630_vm9, %v3160_v15, -inf }
 0x46a   :  { %v1642_v39 = vunpack.c.l.b16 %v1347_v0 }
 0x46c   :  { %v3134_v29 = vpack.c.b16 %v1642_v39, %v1641_v17 }
 0x46d   :  { %v1326_v57 = vpop.f32.mrf.mxu3 }
 0x46e   :  { %1676 = vrot.lane.b32.xlu0 %v3134_v29, %s2459_s23  ;;  %v1327_v58 = vadd.f32 %v2962_v4, %v1326_v57 }
 0x470   :  { %v1348_v9 = vpack.c.bf16 %v1327_v58, %v1327_v58 }
 0x472   :  { %v1643_v28 = vunpack.c.l.b16 %v1348_v9  ;;  %v2119_v9 = vld [vmem:[#allocation11 + $0x8] sm:$0xff] }
 0x473   :  { %1484 = vmatpush.bf16.msrb.mxu1 %v2119_v9 }
 0x475   :  { %v1328_v59 = vpop.f32.mrf.mxu3  ;;  %v1499_v48 = vpop.permute.xlu0 %1498 }
 0x476   :  { %v1329_v60 = vadd.f32 %v2962_v4, %v1328_v59 }
 0x478   :  { %v1349_v2 = vpack.c.bf16 %v1329_v60, %v1329_v60  ;;  %v2118_v60 = vld [vmem:[#allocation11] sm:$0xff] }
 0x479   :  { %1485 = vmatpush.bf16.msrb.mxu1 %v2118_v60 }
 0x47a   :  { %v1644_v25 = vunpack.c.l.b16 %v1349_v2 }
 0x47b   :  { %v772_v61 = vpop.xlane.xlu2 %771 }
 0x47c   :  { %v3143_v22 = vpack.c.b16 %v1644_v25, %v1643_v28 }
 0x47d   :  { %v1497_v18 = vpop.permute.xlu0 %1496 }
 0x47e   :  { %1767 = vrot.lane.b32.xlu0 %v3143_v22, %s2452_s27 }
 0x485   :  { %v1495_v19 = vpop.permute.xlu0 %1494 }
 0x486   :  { %1763 = vrot.lane.b32.xlu0 %v3147_v34, %s2452_s27 }
 0x48d   :  { %768 = vadd.xlane.f32.xlu1 %v767_v45  ;;  %v1493_v31 = vpop.permute.xlu0 %1492 }
 0x48e   :  { %1825 = vrot.lane.b32.xlu0 %v3147_v34, %s2460_s25 }
 0x495   :  { %635 = vmax.xlane.f32.xlu1 %v634_v41  ;;  %v2123_v41 = vld [vmem:[#allocation11 + $0x28] sm:$0xff] }
 0x4b8   :  { %v633_v23 = vpop.xlane.xlu0 %632 }
 0x4b9   :  { %v637_v40 = vsub.f32 %v3115_v3, %v633_v23 }
 0x4bb   :  { %v639_v46 = vmul.f32 1.442695, %v637_v40 }
 0x4bd   :  { %2221 = vpow2.f32 %v639_v46  ;;  %v710_v13 = vpop.xlane.xlu1 %709 }
 0x4be   :  { %2223 = vrcp.f32 %v710_v13 }
 0x4bf   :  { %2225 = vrcp.f32 %v707_v24 }
 0x4c0   :  { %2227 = vrcp.f32 %v772_v61 }
 0x4c3   :  { %v3156_v7 = vpop.eup %2221 }
 0x4c4   :  { %v643_v35 = vsel %vm630_vm9, %v3156_v7, 0.0  ;;  %v2224_v27 = vpop.eup %2223 }
 0x4c5   :  { %644 = vadd.xlane.f32.xlu2 %v643_v35  ;;  %v2226_v3 = vpop.eup %2225  ;;  %v714_v11 = vmul.f32 %v2224_v27, %v3122_v5 }
 0x4c6   :  { %v713_v62 = vmul.f32 %v2226_v3, %v3093_v63 }
 0x4c8   :  { %v3166_v50 = vpack.c.bf16 %v714_v11, %v713_v62  ;;  %v2126_v11 = vld [vmem:[#allocation11] sm:$0xff] }
 0x4cd   :  { %818 = vmax.xlane.f32.xlu2 %v817_v37 }
 0x4cf   :  { %v1331_v55 = vpop.f32.mrf.mxu3 }
 0x4d0   :  { %v1332_v5 = vadd.f32 %v2962_v4, %v1331_v55 }
 0x4d2   :  { %v1350_v36 = vpack.c.bf16 %v1332_v5, %v1332_v5 }
 0x4d4   :  { %v1645_v53 = vunpack.c.l.b16 %v1350_v36 }
 0x4d5   :  { %v1402_v33 = vpop.permute.xlu1 %1401 }
 0x4d6   :  { %1420 = vmatpush.bf16.msra.mxu2 %v1402_v33  ;;  %v2127_v33 = vld [vmem:[#allocation11 + $0x8] sm:$0xff] }
 0x4d7   :  { %v1333_v42 = vpop.f32.mrf.mxu3 }
 0x4d8   :  { %v1334_v52 = vadd.f32 %v2962_v4, %v1333_v42  ;;  %v2228_v4 = vpop.eup %2227 }
 0x4da   :  { %1421 = vmatpush.bf16.msra.mxu2 %v1400_v49  ;;  %v1351_v63 = vpack.c.bf16 %v1334_v52, %v1334_v52  ;;  %v1559_v52 = vpop.permute.xlu0 %1558 }
 0x4dc   :  { %v1646_v32 = vunpack.c.l.b16 %v1351_v63 }
 0x4dd   :  { %2015 = vmatmul.msk.bf16.vlgmr.msra.gmra.mxu2 %vm630_vm9, %v3166_v50 }
 0x4de   :  { %1511 = vmatpush.bf16.msrb.mxu2 %v1499_v48  ;;  %v3176_v21 = vpack.c.b16 %v1646_v32, %v1645_v53 }
 0x4e2   :  { %1512 = vmatpush.bf16.msrb.mxu2 %v1497_v18 }
 0x4e5   :  { %1564 = vrot.lane.b32.xlu2 %v3003_v56, %s2460_s25 }
 0x4e6   :  { %1513 = vmatpush.bf16.msrb.mxu2 %v1495_v19 }
 0x4ea   :  { %1514 = vmatpush.bf16.msrb.mxu2 %v1493_v31 }
 0x4ed   :  { %1560 = vrot.lane.b32.xlu2 %v3032_v47, %s2460_s25  ;;  %v776_v47 = vmul.f32 %v2228_v4, %v3100_v44  ;;  %v814_v44 = vpop.f32.mrf.mxu2 }
 0x4ee   :  { %v820_v59 = vsel %vm630_vm9, %v814_v44, -inf }
 0x4f5   :  { %1680 = vrot.lane.b32.xlu2 %v3176_v21, %s2459_s23 }
 0x4fd   :  { %1678 = vrot.lane.b32.xlu2 %v3143_v22, %s2459_s23 }
 0x500   :  { %v769_v56 = vpop.xlane.xlu1 %768 }
 0x501   :  { %2229 = vrcp.f32 %v769_v56 }
 0x505   :  { %1769 = vrot.lane.b32.xlu2 %v3176_v21, %s2452_s27 }
 0x507   :  { %v2230_v54 = vpop.eup %2229 }
 0x508   :  { %v775_v43 = vmul.f32 %v2230_v54, %v2220_v14  ;;  %v636_v6 = vpop.xlane.xlu1 %635 }
 0x509   :  { %v638_v0 = vsub.f32 %v627_v16, %v636_v6 }
 0x50a   :  { %v3185_v17 = vpack.c.bf16 %v776_v47, %v775_v43 }
 0x50b   :  { %v641_v39 = vmul.f32 1.442695, %v638_v0 }
 0x50c   :  { %2034 = vmatmul.msk.bf16.vlgmr.msrb.gmra.mxu2 %vm630_vm9, %v3185_v17 }
 0x50d   :  { %2231 = vpow2.f32 %v641_v39  ;;  %1831 = vrot.lane.b32.xlu2 %v3176_v21, %s2460_s25 }
 0x513   :  { %v2232_v57 = vpop.eup %2231 }
 0x514   :  { %v646_v58 = vsel %vm630_vm9, %v2232_v57, 0.0 }
 0x515   :  { %647 = vadd.xlane.f32.xlu1 %v646_v58  ;;  %1827 = vrot.lane.b32.xlu2 %v3134_v29, %s2460_s25 }
 0x51d   :  { %821 = vmax.xlane.f32.xlu1 %v820_v59 }
 0x538   :  { %v645_v51 = vpop.xlane.xlu2 %644 }
 0x540   :  { %v819_v2 = vpop.xlane.xlu2 %818 }
 0x541   :  { %v823_v12 = vsub.f32 %v3160_v15, %v819_v2  ;;  %v2124_v2 = vld [vmem:[#allocation11 + $0x30] sm:$0xff] }
 0x543   :  { %v825_v26 = vmul.f32 1.442695, %v823_v12 }
 0x545   :  { %2233 = vpow2.f32 %v825_v26  ;;  %v2129_v26 = vld [vmem:[#allocation11 + $0x18] sm:$0xff] }
 0x546   :  { %2235 = vrcp.f32 %v645_v51  ;;  %v2125_v51 = vld [vmem:[#allocation11 + $0x38] sm:$0xff] }
 0x547   :  { %1614 = vmatpush.bf16.msra.mxu2 %v2125_v51 }
 0x548   :  { %v1565_v28 = vpop.permute.xlu2 %1564 }
 0x549   :  { %1577 = vmatpush.bf16.msra.mxu1 %v1565_v28  ;;  %v2128_v28 = vld [vmem:[#allocation11 + $0x10] sm:$0xff] }
 0x54b   :  { %v3196_v25 = vpop.eup %2233  ;;  %1615 = vmatpush.bf16.msra.mxu2 %v2124_v2 }
 0x54c   :  { %v829_v1 = vsel %vm630_vm9, %v3196_v25, 0.0  ;;  %v2236_v8 = vpop.eup %2235 }
 0x54d   :  { %830 = vadd.xlane.f32.xlu1 %v829_v1  ;;  %v651_v24 = vmul.f32 %v2236_v8, %v3156_v7 }
 0x54f   :  { %1726 = vmatpush.bf16.msrb.mxu2 %v2129_v26 }
 0x550   :  { %v1561_v40 = vpop.permute.xlu2 %1560 }
 0x553   :  { %1727 = vmatpush.bf16.msrb.mxu2 %v2128_v28 }
 0x558   :  { %v1681_v13 = vpop.permute.xlu2 %1680 }
 0x560   :  { %v1423_v19 = vpop.f32.mrf.mxu2  ;;  %v1679_v27 = vpop.permute.xlu2 %1678 }
 0x566   :  { %1562 = vrot.lane.b32.xlu1 %v2974_v10, %s2460_s25  ;;  %v2122_v10 = vld [vmem:[#allocation11 + $0x20] sm:$0xff] }
 0x568   :  { %v1425_v35 = vpop.f32.mrf.mxu2  ;;  %v1770_v49 = vpop.permute.xlu2 %1769 }
 0x569   :  { %v1428_v7 = vpack.c.bf16 %v1425_v35, %v1423_v19  ;;  %v2158_v35 = vld [vmem:[%s3253_s7] ss:$0 sm:$0xff]  ;;  %s2461_s7 = smov [#allocation14]  }
 0x56a   :  { %s1896_s29 = sshll.u32 %s2461_s7, 4  ;;  %s1897_s29 = int_to_ptr.vmem [resolvable:$true] %s1896_s29 }
 0x570   :  { %v1832_v62 = vpop.permute.xlu2 %1831 }
 0x578   :  { %v1828_v58 = vpop.permute.xlu2 %1827 }
 0x588   :  { %v648_v38 = vpop.xlane.xlu1 %647 }
 0x589   :  { %2237 = vrcp.f32 %v648_v38  ;;  %v2133_v38 = vld [vmem:[#allocation11 + $0x38] sm:$0xff] }
 0x58f   :  { %v2238_v14 = vpop.eup %2237  ;;  %v1516_v15 = vpop.f32.mrf.mxu2 }
 0x590   :  { %v652_v45 = vmul.f32 %v2238_v14, %v2232_v57  ;;  %v822_v16 = vpop.xlane.xlu1 %821  ;;  %v2132_v14 = vld [vmem:[#allocation11 + $0x30] sm:$0xff] }
 0x591   :  { %v824_v48 = vsub.f32 %v814_v44, %v822_v16 }
 0x592   :  { %v653_v18 = vpack.c.bf16 %v652_v45, %v651_v24 }
 0x593   :  { %v827_v31 = vmul.f32 1.442695, %v824_v48 }
 0x594   :  { %2014 = vmatmul.msk.bf16.vlgmr.msra.gmra.mxu0 %vm630_vm9, %v653_v18 }
 0x595   :  { %2239 = vpow2.f32 %v827_v31  ;;  %1548 = vmatpush.bf16.msra.mxu0 %v2123_v41 }
 0x597   :  { %v1518_v37 = vpop.f32.mrf.mxu2 }
 0x598   :  { %v1521_v3 = vpack.c.bf16 %v1518_v37, %v1516_v15 }
 0x599   :  { %1549 = vmatpush.bf16.msra.mxu0 %v2122_v10 }
 0x59b   :  { %v2240_v23 = vpop.eup %2239 }
 0x59c   :  { %v832_v46 = vsel %vm630_vm9, %v2240_v23, 0.0 }
 0x59d   :  { %833 = vadd.xlane.f32.xlu1 %v832_v46 }
 0x5a4   :  { %2024 = vmatmul.msk.bf16.vlgmr.msrb.gmra.mxu0 %vm600_vm15, %v1428_v7 }
 0x5a5   :  { %1659 = vmatpush.bf16.msrb.mxu0 %v3176_v21 }
 0x5a9   :  { %1660 = vmatpush.bf16.msrb.mxu0 %v3143_v22 }
 0x5ad   :  { %1661 = vmatpush.bf16.msrb.mxu0 %v3134_v29 }
 0x5b1   :  { %1662 = vmatpush.bf16.msrb.mxu0 %v3147_v34 }
 0x5b4   :  { %2043 = vmatmul.msk.bf16.vlgmr.msra.gmra.mxu0 %vm600_vm15, %v1521_v3 }
 0x5b5   :  { %1755 = vmatpush.bf16.msra.mxu0 %v2127_v33 }
 0x5b6   :  { %1674 = vrot.lane.b32.xlu1 %v3147_v34, %s2459_s23 }
 0x5b9   :  { %1756 = vmatpush.bf16.msra.mxu0 %v2126_v11 }
 0x5be   :  { %1765 = vrot.lane.b32.xlu1 %v3134_v29, %s2452_s27 }
 0x5c0   :  { %v831_v55 = vpop.xlane.xlu1 %830 }
 0x5c4   :  { %2054 = vmatmul.msk.bf16.vlgmr.msrb.gmra.mxu0 %vm630_vm9, %v653_v18 }
 0x5c5   :  { %1841 = vmatpush.bf16.msrb.mxu0 %v1832_v62 }
 0x5c6   :  { %1829 = vrot.lane.b32.xlu1 %v3143_v22, %s2460_s25  ;;  %v1677_v22 = vpop.permute.xlu0 %1676 }
 0x5ce   :  { %v1768_v47 = vpop.permute.xlu0 %1767 }
 0x5d6   :  { %v1764_v0 = vpop.permute.xlu0 %1763 }
 0x5d8   :  { %v1563_v42 = vpop.permute.xlu1 %1562 }
 0x5d9   :  { %1578 = vmatpush.bf16.msra.mxu1 %v1563_v42 }
 0x5dd   :  { %1579 = vmatpush.bf16.msra.mxu1 %v1561_v40 }
 0x5de   :  { %v1826_v44 = vpop.permute.xlu0 %1825 }
 0x5e1   :  { %1580 = vmatpush.bf16.msra.mxu1 %v1559_v52 }
 0x610   :  { %v834_v63 = vpop.xlane.xlu1 %833 }
 0x611   :  { %v1389_v5 = vpop.f32.mrf.mxu0  ;;  %2241 = vrcp.f32 %v834_v63 }
 0x612   :  { %2243 = vrcp.f32 %v831_v55 }
 0x617   :  { %v2242_v32 = vpop.eup %2241 }
 0x618   :  { %v2244_v53 = vpop.eup %2243  ;;  %v838_v21 = vmul.f32 %v2242_v32, %v2240_v23 }
 0x619   :  { %v1391_v34 = vpop.f32.mrf.mxu0  ;;  %v837_v61 = vmul.f32 %v2244_v53, %v3196_v25 }
 0x61a   :  { %v1394_v36 = vpack.c.bf16 %v1391_v34, %v1389_v5 }
 0x61b   :  { %v839_v54 = vpack.c.bf16 %v838_v21, %v837_v61 }
 0x61c   :  { %2033 = vmatmul.msk.bf16.vlgmr.msrb.gmra.mxu1 %vm600_vm15, %v1394_v36 }
 0x61d   :  { %1690 = vmatpush.bf16.msrb.mxu1 %v1681_v13 }
 0x621   :  { %1691 = vmatpush.bf16.msrb.mxu1 %v1679_v27  ;;  %v3219_v29 = vpop.f32.mrf.mxu0 }
 0x625   :  { %1692 = vmatpush.bf16.msrb.mxu1 %v1677_v22 }
 0x628   :  { %v1675_v56 = vpop.permute.xlu1 %1674 }
 0x629   :  { %v3222_v4 = vpop.f32.mrf.mxu0  ;;  %1693 = vmatpush.bf16.msrb.mxu1 %v1675_v56 }
 0x62c   :  { %2044 = vmatmul.msk.bf16.vlgmr.msra.gmra.mxu1 %vm630_vm9, %v839_v54 }
 0x62d   :  { %1779 = vmatpush.bf16.msra.mxu1 %v1770_v49 }
 0x630   :  { %v1766_v43 = vpop.permute.xlu1 %1765 }
 0x631   :  { %1780 = vmatpush.bf16.msra.mxu1 %v1768_v47  ;;  %v1551_v6 = vpop.f32.mrf.mxu0 }
 0x635   :  { %1781 = vmatpush.bf16.msra.mxu1 %v1766_v43 }
 0x638   :  { %v1830_v39 = vpop.permute.xlu1 %1829 }
 0x639   :  { %1782 = vmatpush.bf16.msra.mxu1 %v1764_v0  ;;  %v1553_v57 = vpop.f32.mrf.mxu0  ;;  %1842 = vmatpush.bf16.msrb.mxu0 %v1830_v39 }
 0x63c   :  { %2055 = vmatmul.msk.bf16.vlgmr.msrb.gmra.mxu1 %vm630_vm9, %v3166_v50 }
 0x63d   :  { %1843 = vmatpush.bf16.msrb.mxu0 %v1828_v58  ;;  %1877 = vmatpush.bf16.msrb.mxu1 %v2133_v38 }
 0x641   :  { %v1664_v59 = vpop.f32.mrf.mxu0  ;;  %1844 = vmatpush.bf16.msrb.mxu0 %v1826_v44  ;;  %1878 = vmatpush.bf16.msrb.mxu1 %v2132_v14 }
 0x649   :  { %v1666_v9 = vpop.f32.mrf.mxu0 }
 0x64a   :  { %v1669_v60 = vpack.c.bf16 %v1666_v9, %v1664_v59 }
 0x64c   :  { %2073 = vmatmul.msk.bf16.vlgmr.msra.gmra.mxu0 %vm600_vm15, %v1669_v60  ;;  %2074 = vmatmul.msk.bf16.vlgmr.msra.gmra.mxu1 %vm630_vm9, %v3185_v17  ;;  %v2130_v17 = vld [vmem:[#allocation11 + $0x20] sm:$0xff] }
 0x65c   :  { %2084 = vmatmul.msk.bf16.vlgmr.msrb.gmra.mxu0 %vm630_vm9, %v839_v54 }
 0x699   :  { %v1487_v12 = vpop.f32.mrf.mxu1 }
 0x69a   :  { %v1488_v40 = vadd.f32 %v1487_v12, %v3219_v29 }
 0x69c   :  { %v1556_v46 = vadd.f32 %v1551_v6, %v1488_v40 }
 0x6a1   :  { %v1489_v50 = vpop.f32.mrf.mxu1 }
 0x6a2   :  { %v1490_v13 = vadd.f32 %v1489_v50, %v3222_v4 }
 0x6a4   :  { %v1557_v27 = vadd.f32 %v1553_v57, %v1490_v13 }
 0x6a9   :  { %v1582_v25 = vpop.f32.mrf.mxu1 }
 0x6b1   :  { %v1584_v1 = vpop.f32.mrf.mxu1 }
 0x6b2   :  { %v1587_v20 = vpack.c.bf16 %v1584_v1, %v1582_v25 }
 0x6b4   :  { %2053 = vmatmul.msk.bf16.vlgmr.msra.gmra.mxu2 %vm600_vm15, %v1587_v20 }
 0x6b5   :  { %1815 = vmatpush.bf16.msra.mxu2 %v2131_v30 }
 0x6b9   :  { %v1695_v8 = vpop.f32.mrf.mxu1  ;;  %1816 = vmatpush.bf16.msra.mxu2 %v2130_v17 }
 0x6c1   :  { %v1697_v24 = vpop.f32.mrf.mxu1 }
 0x6c2   :  { %v1700_v45 = vpack.c.bf16 %v1697_v24, %v1695_v8 }
 0x6c4   :  { %2064 = vmatmul.msk.bf16.vlgmr.msrb.gmra.mxu2 %vm600_vm15, %v1700_v45 }
 0x6c9   :  { %v1758_v16 = vpop.f32.mrf.mxu0  ;;  %v1784_v48 = vpop.f32.mrf.mxu1 }
 0x6d1   :  { %v1760_v41 = vpop.f32.mrf.mxu0  ;;  %v1786_v18 = vpop.f32.mrf.mxu1 }
 0x6d2   :  { %v1789_v19 = vpack.c.bf16 %v1786_v18, %v1784_v48 }
 0x6d4   :  { %2083 = vmatmul.msk.bf16.vlgmr.msra.gmra.mxu2 %vm600_vm15, %v1789_v19 }
 0x6d9   :  { %v1846_v31 = vpop.f32.mrf.mxu0 }
 0x6e1   :  { %v1848_v10 = vpop.f32.mrf.mxu0 }
 0x6e2   :  { %v1851_v23 = vpack.c.bf16 %v1848_v10, %v1846_v31 }
 0x6e4   :  { %2093 = vmatmul.msk.bf16.vlgmr.msrb.gmra.mxu1 %vm600_vm15, %v1851_v23 }
 0x737   :  { %v1617_v7 = vpop.f32.mrf.mxu2 }
 0x738   :  { %v1622_v15 = vadd.f32 %v1617_v7, %v1556_v46 }
 0x73a   :  { %v1627_v37 = vadd.f32 %v2158_v35, %v1622_v15 }
 0x73c   :  { %1629 = vst [vmem:[#allocation14] sm:$0xff] %v1627_v37 }
 0x73f   :  { %v1619_v33 = vpop.f32.mrf.mxu2 }
 0x740   :  { %v1623_v3 = vadd.f32 %v1619_v33, %v1557_v27 }
 0x742   :  { %v1628_v11 = vadd.f32 %v2158_v35, %v1623_v3 }
 0x744   :  { %1630 = vst [vmem:[#allocation14 + $0x8] sm:$0xff] %v1628_v11 }
 0x747   :  { %v1729_v49 = vpop.f32.mrf.mxu2 }
 0x748   :  { %v1759_v42 = vadd.f32 %v1758_v16, %v1729_v49 }
 0x74f   :  { %v1731_v62 = vpop.f32.mrf.mxu2 }
 0x750   :  { %v1761_v29 = vadd.f32 %v1760_v41, %v1731_v62 }
 0x757   :  { %v1818_v55 = vpop.f32.mrf.mxu2 }
 0x758   :  { %v1823_v52 = vadd.f32 %v1818_v55, %v1759_v42 }
 0x75f   :  { %v1820_v36 = vpop.f32.mrf.mxu2 }
 0x760   :  { %v1824_v32 = vadd.f32 %v1820_v36, %v1761_v29 }
 0x761   :  { %v1880_v5 = vpop.f32.mrf.mxu1 }
 0x762   :  { %v1885_v34 = vadd.f32 %v1880_v5, %v1823_v52 }
 0x764   :  { %v1887_v63 = vadd.f32 %v2158_v35, %v1885_v34 }
 0x766   :  { %1890 = vst [vmem:[#allocation14 + $0x10] sm:$0xff] %v1887_v63 }
 0x769   :  { %v1882_v22 = vpop.f32.mrf.mxu1 }
 0x76a   :  { %v1886_v53 = vadd.f32 %v1882_v22, %v1824_v32 }
 0x76c   :  { %v1888_v21 = vadd.f32 %v2158_v35, %v1886_v53 }
 0x76e   :  { %1891 = vst [vmem:[#allocation14 + $0x18] sm:$0xff] %v1888_v21 }
 0x76f   :  { %1904 = dma.vmem_to_hbm [thread:$0]  %s1897_s29, 512, %s1899_s11, [#allocation4], %s2448_s17, %s2448_s17, %s2449_s18  }
 0x770   :  { %2445 = dma.done.wait [#allocation4], 512  }
 0x771   :  { %2446 = vsyncadd [#allocation4], 4294966784 }
 0x772   :  { %1909 = vsyncpa [#allocation3], 1 }
 0x773   :  { %1910 = vsyncpa [#allocation6], 1 }
 0x774   :  { %1911 = vsyncpa [#allocation9], 1 }
 0x775   :  { %1912 = vsyncpa [#allocation12], 1 }
 0x776   :  { %1913 = vsyncpa [#allocation4], 1 }

</bundles_post_ra>
